<compile_context>
chip_gen: v5e
topology: v5e:2x2
jax: 0.10.0
libtpu: 0.0.40
codegen_flags: <defaults>
</compile_context>

<pallas_src>
import jax
import jax.numpy as jnp
from jax.experimental import pallas as pl
from jax.experimental.pallas import tpu as pltpu

HIDDEN = 256
MAX_TILE_B = 1024      # largest batch tile (per-step overhead amortized; ~3 MiB VMEM)
SINGLE_TILE_B = 256    # batches up to this run as a single grid step


def _round_up(n, m):
    return ((n + m - 1) // m) * m


def _choose_tile_b(batch):
    """Batch tile: large tiles amortize the ~0.35us/grid-step overhead; mid/large
    batches get >= 2 grid steps so both v7x TensorCores have work under
    dimension_semantics=("parallel",).  Tiles are either the whole (padded)
    batch or a multiple of 128 lanes."""
    bp = _round_up(batch, 16)          # bf16 packs 16 rows per sublane tile
    if bp <= SINGLE_TILE_B:
        return bp                      # tiny/small batch: one step
    if bp <= 2 * MAX_TILE_B:
        return _round_up((bp + 1) // 2, 128)   # exactly 2 parallel steps
    return MAX_TILE_B


def _critic_kernel(xT_ref, w1T_ref, b1_ref, w2T_ref, b2_ref, w3T_ref, b3_ref,
                   wq_ref, bq_ref, out_ref):
    # Layer 1 (fused obs/goal/action matmul; action scale already folded in W1).
    h = jnp.dot(w1T_ref[...], xT_ref[...],
                preferred_element_type=jnp.float32) + b1_ref[...]
    h = jnp.maximum(h, 0.0)

    # Layers 2/3: bf16 MXU operands, f32 accumulate, f32 bias + ReLU.
    h = jnp.maximum(
        jnp.dot(w2T_ref[...], h.astype(jnp.bfloat16),
                preferred_element_type=jnp.float32) + b2_ref[...], 0.0)
    h = jnp.maximum(
        jnp.dot(w3T_ref[...], h.astype(jnp.bfloat16),
                preferred_element_type=jnp.float32) + b3_ref[...], 0.0)

    # Output head (K=256 -> 1): VPU multiply + cross-sublane reduction instead
    # of a nearly-empty MXU matmul.  Kept in f32 (v5e VPU/EUP have no bf16).
    q = jnp.sum(h * wq_ref[...].astype(jnp.float32), axis=0, keepdims=True)
    # q is already a lane-dense (1, tb) row -> single unmasked store.
    out_ref[...] = (q + bq_ref[0]).astype(out_ref.dtype)


def prepare_params(params, max_action, action_dim):
    """One-time weight prep, hoisted out of the per-call hot path:
    fold 1/max_action into W1's action rows, transpose all weights so the batch
    is the minor (lane) axis in-kernel, cast MXU operands to bf16."""
    w1, b1, w2, b2, w3, b3, wq, bq = params
    d_obs = w1.shape[0] - action_dim
    w1_fused = jnp.concatenate([w1[:d_obs], w1[d_obs:] / max_action], axis=0)
    return (
        w1_fused.T.astype(jnp.bfloat16),             # [H, d_in]
        b1.reshape(HIDDEN, 1).astype(jnp.float32),   # [H, 1]
        w2.T.astype(jnp.bfloat16),                   # [H, H]
        b2.reshape(HIDDEN, 1).astype(jnp.float32),
        w3.T.astype(jnp.bfloat16),                   # [H, H]
        b3.reshape(HIDDEN, 1).astype(jnp.float32),
        wq.reshape(HIDDEN, 1).astype(jnp.bfloat16),  # [H, 1]
        bq.reshape(-1).astype(jnp.float32),          # [1]   (SMEM scalar)
    )


def critic_forward(obs_goal, actions, prepared, tile_b=None):
    """obs_goal: [B, obs+goal] f32, actions: [B, action] f32 -> q: [B, 1] f32."""
    w1T, b1c, w2T, b2c, w3T, b3c, wq_col, bq_s = prepared
    B = obs_goal.shape[0]
    d_in = w1T.shape[1]

    # Hot-path activation prep only (weights prepared once): concat the raw
    # inputs (scale folded into W1), cast bf16, put batch on lanes, pad tiles.
    xT = jnp.concatenate([obs_goal, actions], axis=1).astype(jnp.bfloat16).T
    tb = _choose_tile_b(B) if tile_b is None else tile_b
    Bp = _round_up(B, tb)
    if Bp != B:
        xT = jnp.pad(xT, ((0, 0), (0, Bp - B)))
    nb = Bp // tb
    # Note: for latency-critical B < 128 a fused plain-XLA path is competitive;
    # the kernel path is kept unconditionally so this script always runs it.

    # Weights/biases: same block for every grid step -> VMEM-resident.
    resident = lambda shape: pl.BlockSpec(shape, lambda i: (0, 0))

    flops = 2 * Bp * (d_in * HIDDEN + 2 * HIDDEN * HIDDEN + HIDDEN)
    bytes_accessed = (Bp * d_in * 2 + Bp * 4                        # x + q
                      + (d_in * HIDDEN + 2 * HIDDEN * HIDDEN + HIDDEN) * 2
                      + 3 * HIDDEN * 4 + 4)                         # weights + biases

    out = pl.pallas_call(
        _critic_kernel,
        out_shape=jax.ShapeDtypeStruct((1, Bp), jnp.float32),
        grid_spec=pltpu.PrefetchScalarGridSpec(
            num_scalar_prefetch=0,
            grid=(nb,),
            in_specs=[
                pl.BlockSpec((d_in, tb), lambda i: (0, i)),         # x tile (batch on lanes)
                resident((HIDDEN, d_in)),                           # W1^T (scale folded)
                resident((HIDDEN, 1)),                              # b1
                resident((HIDDEN, HIDDEN)),                         # W2^T
                resident((HIDDEN, 1)),                              # b2
                resident((HIDDEN, HIDDEN)),                         # W3^T
                resident((HIDDEN, 1)),                              # b3
                resident((HIDDEN, 1)),                              # wq column
                pl.BlockSpec(memory_space=pltpu.MemorySpace.SMEM),  # bq scalar
            ],
            out_specs=pl.BlockSpec((1, tb), lambda i: (0, i)),      # lane-dense row
        ),
        compiler_params=pltpu.CompilerParams(
            dimension_semantics=("parallel",)),
        cost_estimate=pl.CostEstimate(flops=flops, transcendentals=0,
                                      bytes_accessed=bytes_accessed),
    )(xT, w1T, b1c, w2T, b2c, w3T, b3c, wq_col, bq_s)

    return out[0, :B].reshape(B, 1)


def init_params(key, in_dim):
    """Deterministic init matching nn.Linear shapes (weights stored transposed
    as [in_features, out_features])."""
    ks = jax.random.split(key, 8)

    def lin(kw, kb, fan_in, fan_out):
        bound = 1.0 / jnp.sqrt(fan_in)
        w = jax.random.uniform(kw, (fan_in, fan_out), jnp.float32, -bound, bound)
        b = jax.random.uniform(kb, (1, fan_out), jnp.float32, -bound, bound)
        return w, b

    w1, b1 = lin(ks[0], ks[1], in_dim, HIDDEN)
    w2, b2 = lin(ks[2], ks[3], HIDDEN, HIDDEN)
    w3, b3 = lin(ks[4], ks[5], HIDDEN, HIDDEN)
    wq, bq = lin(ks[6], ks[7], HIDDEN, 1)
    return (w1, b1, w2, b2, w3, b3, wq, bq)


def reference_forward_f32(obs_goal, actions, params, max_action):
    """Exact PyTorch-module semantics in f32 (concat + 4 matmuls)."""
    inp = jnp.concatenate([obs_goal, actions / max_action], axis=1)
    w1, b1, w2, b2, w3, b3, wq, bq = params
    h = jnp.maximum(inp @ w1 + b1, 0.0)
    h = jnp.maximum(h @ w2 + b2, 0.0)
    h = jnp.maximum(h @ w3 + b3, 0.0)
    return h @ wq + bq


def reference_forward_bf16(obs_goal, actions, prepared):
    """Mirror of the kernel's transposed bf16/f32 recipe (same prepared weights)."""
    w1T, b1c, w2T, b2c, w3T, b3c, wq_col, bq_s = prepared
    xT = jnp.concatenate([obs_goal, actions], axis=1).astype(jnp.bfloat16).T
    h = jnp.maximum(jnp.dot(w1T, xT, preferred_element_type=jnp.float32) + b1c, 0.0)
    h = jnp.maximum(jnp.dot(w2T, h.astype(jnp.bfloat16),
                            preferred_element_type=jnp.float32) + b2c, 0.0)
    h = jnp.maximum(jnp.dot(w3T, h.astype(jnp.bfloat16),
                            preferred_element_type=jnp.float32) + b3c, 0.0)
    q = jnp.sum(h * wq_col.astype(jnp.float32), axis=0, keepdims=True) + bq_s.reshape(1, 1)
    return q.T


if __name__ == "__main__":
    # env_params consistent with a Fetch-style env.
    env_params = {"obs": 10, "goal": 3, "action": 4, "action_max": 1.0}
    B = 2
    in_dim = env_params["obs"] + env_params["goal"] + env_params["action"]

    key = jax.random.PRNGKey(0)
    k_obs, k_act, k_param = jax.random.split(key, 3)
    obs_goal = jax.random.normal(
        k_obs, (B, env_params["obs"] + env_params["goal"]), jnp.float32)
    actions = jax.random.uniform(
        k_act, (B, env_params["action"]), jnp.float32,
        -env_params["action_max"], env_params["action_max"])
    params = init_params(k_param, in_dim)
    prepared = prepare_params(params, env_params["action_max"],
                              env_params["action"])

    q = critic_forward(obs_goal, actions, prepared)
    q = jax.block_until_ready(q)
    assert q.shape == (B, 1), q.shape

    # Tight check against a reference mirroring the kernel's bf16/f32 recipe.
    q_bf16 = reference_forward_bf16(obs_goal, actions, prepared)
    assert jnp.allclose(q, q_bf16, atol=1e-3, rtol=1e-3), (q, q_bf16)

    # Loose check against the exact f32 PyTorch semantics (bf16 weight error).
    q_f32 = reference_forward_f32(obs_goal, actions, params,
                                  env_params["action_max"])
    assert jnp.allclose(q, q_f32, atol=5e-2, rtol=5e-2), (q, q_f32)

    print("KERNEL_OK")
</pallas_src>

<mosaic_0001>
module attributes {stable_mosaic.version = 11 : i64} {
  func.func @_critic_kernel(%arg0: i32, %arg1: memref<17x16xbf16, #tpu.memory_space<vmem>>, %arg2: memref<256x17xbf16, #tpu.memory_space<vmem>>, %arg3: memref<256x1xf32, #tpu.memory_space<vmem>>, %arg4: memref<256x256xbf16, #tpu.memory_space<vmem>>, %arg5: memref<256x1xf32, #tpu.memory_space<vmem>>, %arg6: memref<256x256xbf16, #tpu.memory_space<vmem>>, %arg7: memref<256x1xf32, #tpu.memory_space<vmem>>, %arg8: memref<256x1xbf16, #tpu.memory_space<vmem>>, %arg9: memref<1xf32, #tpu.memory_space<smem>>, %arg10: memref<1x16xf32, #tpu.memory_space<vmem>>) attributes {dimension_semantics = [#tpu.dimension_semantics<parallel>], iteration_bounds = array<i64: 1>, scalar_prefetch = 0 : i64, scratch_operands = 0 : i64, tpu.core_type = #tpu.core_type<tc>, window_params = [{transform_indices = @transform_0, window_bounds = array<i64: 17, 16>}, {pipeline_mode = #tpu.pipeline_mode<synchronous>, transform_indices = @transform_1, window_bounds = array<i64: 256, 17>}, {pipeline_mode = #tpu.pipeline_mode<synchronous>, transform_indices = @transform_2, window_bounds = array<i64: 256, 1>}, {pipeline_mode = #tpu.pipeline_mode<synchronous>, transform_indices = @transform_3, window_bounds = array<i64: 256, 256>}, {pipeline_mode = #tpu.pipeline_mode<synchronous>, transform_indices = @transform_4, window_bounds = array<i64: 256, 1>}, {pipeline_mode = #tpu.pipeline_mode<synchronous>, transform_indices = @transform_5, window_bounds = array<i64: 256, 256>}, {pipeline_mode = #tpu.pipeline_mode<synchronous>, transform_indices = @transform_6, window_bounds = array<i64: 256, 1>}, {pipeline_mode = #tpu.pipeline_mode<synchronous>, transform_indices = @transform_7, window_bounds = array<i64: 256, 1>}, {transform_indices = @transform_8, window_bounds = array<i64: 1>}, {transform_indices = @transform_9, window_bounds = array<i64: 1, 16>}]} {
    %c0 = arith.constant 0 : index
    %c0_0 = arith.constant 0 : index
    %0 = vector.load %arg2[%c0, %c0_0] : memref<256x17xbf16, #tpu.memory_space<vmem>>, vector<256x17xbf16>
    %c0_1 = arith.constant 0 : index
    %c0_2 = arith.constant 0 : index
    %1 = vector.load %arg1[%c0_1, %c0_2] : memref<17x16xbf16, #tpu.memory_space<vmem>>, vector<17x16xbf16>
    %cst = arith.constant dense<0.000000e+00> : vector<256x16xf32>
    %2 = tpu.matmul %0, %1, %cst {dimension_numbers = #tpu.dot_dimension_numbers<[1], [0], [0], [1], [0, 0, 1, 1], [], []>} : vector<256x17xbf16>, vector<17x16xbf16>, vector<256x16xf32> -> vector<256x16xf32>
    %c0_3 = arith.constant 0 : index
    %c0_4 = arith.constant 0 : index
    %3 = vector.load %arg3[%c0_3, %c0_4] : memref<256x1xf32, #tpu.memory_space<vmem>>, vector<256x1xf32>
    %4 = vector.broadcast %3 : vector<256x1xf32> to vector<256x16xf32>
    %5 = arith.addf %2, %4 : vector<256x16xf32>
    %cst_5 = arith.constant 0.000000e+00 : f32
    %6 = vector.broadcast %cst_5 : f32 to vector<256x16xf32>
    %7 = arith.maximumf %5, %6 : vector<256x16xf32>
    %c0_6 = arith.constant 0 : index
    %c0_7 = arith.constant 0 : index
    %8 = vector.load %arg4[%c0_6, %c0_7] : memref<256x256xbf16, #tpu.memory_space<vmem>>, vector<256x256xbf16>
    %9 = arith.truncf %7 : vector<256x16xf32> to vector<256x16xbf16>
    %cst_8 = arith.constant dense<0.000000e+00> : vector<256x16xf32>
    %10 = tpu.matmul %8, %9, %cst_8 {dimension_numbers = #tpu.dot_dimension_numbers<[1], [0], [0], [1], [0, 0, 1, 1], [], []>} : vector<256x256xbf16>, vector<256x16xbf16>, vector<256x16xf32> -> vector<256x16xf32>
    %c0_9 = arith.constant 0 : index
    %c0_10 = arith.constant 0 : index
    %11 = vector.load %arg5[%c0_9, %c0_10] : memref<256x1xf32, #tpu.memory_space<vmem>>, vector<256x1xf32>
    %12 = vector.broadcast %11 : vector<256x1xf32> to vector<256x16xf32>
    %13 = arith.addf %10, %12 : vector<256x16xf32>
    %cst_11 = arith.constant 0.000000e+00 : f32
    %14 = vector.broadcast %cst_11 : f32 to vector<256x16xf32>
    %15 = arith.maximumf %13, %14 : vector<256x16xf32>
    %c0_12 = arith.constant 0 : index
    %c0_13 = arith.constant 0 : index
    %16 = vector.load %arg6[%c0_12, %c0_13] : memref<256x256xbf16, #tpu.memory_space<vmem>>, vector<256x256xbf16>
    %17 = arith.truncf %15 : vector<256x16xf32> to vector<256x16xbf16>
    %cst_14 = arith.constant dense<0.000000e+00> : vector<256x16xf32>
    %18 = tpu.matmul %16, %17, %cst_14 {dimension_numbers = #tpu.dot_dimension_numbers<[1], [0], [0], [1], [0, 0, 1, 1], [], []>} : vector<256x256xbf16>, vector<256x16xbf16>, vector<256x16xf32> -> vector<256x16xf32>
    %c0_15 = arith.constant 0 : index
    %c0_16 = arith.constant 0 : index
    %19 = vector.load %arg7[%c0_15, %c0_16] : memref<256x1xf32, #tpu.memory_space<vmem>>, vector<256x1xf32>
    %20 = vector.broadcast %19 : vector<256x1xf32> to vector<256x16xf32>
    %21 = arith.addf %18, %20 : vector<256x16xf32>
    %cst_17 = arith.constant 0.000000e+00 : f32
    %22 = vector.broadcast %cst_17 : f32 to vector<256x16xf32>
    %23 = arith.maximumf %21, %22 : vector<256x16xf32>
    %c0_18 = arith.constant 0 : index
    %c0_19 = arith.constant 0 : index
    %24 = vector.load %arg8[%c0_18, %c0_19] : memref<256x1xbf16, #tpu.memory_space<vmem>>, vector<256x1xbf16>
    %25 = arith.extf %24 : vector<256x1xbf16> to vector<256x1xf32>
    %26 = vector.broadcast %25 : vector<256x1xf32> to vector<256x16xf32>
    %27 = arith.mulf %23, %26 : vector<256x16xf32>
    %cst_20 = arith.constant dense<0.000000e+00> : vector<16xf32>
    %28 = vector.multi_reduction <add>, %27, %cst_20 [0] : vector<256x16xf32> to vector<16xf32>
    %29 = vector.shape_cast %28 : vector<16xf32> to vector<1x16xf32>
    %c0_21 = arith.constant 0 : index
    %30 = memref.load %arg9[%c0_21] : memref<1xf32, #tpu.memory_space<smem>>
    %31 = vector.broadcast %30 : f32 to vector<1x16xf32>
    %32 = arith.addf %29, %31 : vector<1x16xf32>
    %c0_22 = arith.constant 0 : index
    %c0_23 = arith.constant 0 : index
    %33 = vector.load %arg10[%c0_22, %c0_23] : memref<1x16xf32, #tpu.memory_space<vmem>>, vector<1x16xf32>
    tpu.vector_store %arg10[%c0_22, %c0_23], %32 {strides = array<i32>} : memref<1x16xf32, #tpu.memory_space<vmem>>, vector<1x16xf32>,
    return
  }
  func.func @transform_0(%arg0: i32) -> (i32, i32) {
    %c0_i32 = arith.constant 0 : i32
    %c0_i32_0 = arith.constant 0 : i32
    return %c0_i32, %arg0 : i32, i32
  }
  func.func @transform_1(%arg0: i32) -> (i32, i32) {
    %c0_i32 = arith.constant 0 : i32
    %c0_i32_0 = arith.constant 0 : i32
    %c0_i32_1 = arith.constant 0 : i32
    return %c0_i32, %c0_i32_0 : i32, i32
  }
  func.func @transform_2(%arg0: i32) -> (i32, i32) {
    %c0_i32 = arith.constant 0 : i32
    %c0_i32_0 = arith.constant 0 : i32
    %c0_i32_1 = arith.constant 0 : i32
    return %c0_i32, %c0_i32_0 : i32, i32
  }
  func.func @transform_3(%arg0: i32) -> (i32, i32) {
    %c0_i32 = arith.constant 0 : i32
    %c0_i32_0 = arith.constant 0 : i32
    %c0_i32_1 = arith.constant 0 : i32
    return %c0_i32, %c0_i32_0 : i32, i32
  }
  func.func @transform_4(%arg0: i32) -> (i32, i32) {
    %c0_i32 = arith.constant 0 : i32
    %c0_i32_0 = arith.constant 0 : i32
    %c0_i32_1 = arith.constant 0 : i32
    return %c0_i32, %c0_i32_0 : i32, i32
  }
  func.func @transform_5(%arg0: i32) -> (i32, i32) {
    %c0_i32 = arith.constant 0 : i32
    %c0_i32_0 = arith.constant 0 : i32
    %c0_i32_1 = arith.constant 0 : i32
    return %c0_i32, %c0_i32_0 : i32, i32
  }
  func.func @transform_6(%arg0: i32) -> (i32, i32) {
    %c0_i32 = arith.constant 0 : i32
    %c0_i32_0 = arith.constant 0 : i32
    %c0_i32_1 = arith.constant 0 : i32
    return %c0_i32, %c0_i32_0 : i32, i32
  }
  func.func @transform_7(%arg0: i32) -> (i32, i32) {
    %c0_i32 = arith.constant 0 : i32
    %c0_i32_0 = arith.constant 0 : i32
    %c0_i32_1 = arith.constant 0 : i32
    return %c0_i32, %c0_i32_0 : i32, i32
  }
  func.func @transform_8(%arg0: i32) -> i32 {
    %c0_i32 = arith.constant 0 : i32
    %c0_i32_0 = arith.constant 0 : i32
    return %c0_i32 : i32
  }
  func.func @transform_9(%arg0: i32) -> (i32, i32) {
    %c0_i32 = arith.constant 0 : i32
    %c0_i32_0 = arith.constant 0 : i32
    return %c0_i32, %arg0 : i32, i32
  }
}

</mosaic_0001>

<bundles_post_ra>
// kernel: tpu_custom_call.1
= control target key start
LH: loop header
LB: loop body
LE: loop exit
PB: predicated region body
PF: predicated region fallthrough
CT: control target
= control target key end

     0   :  { %vm400_vm0 = vcmask 1040384   ;;  %v2719_v3 = vmov 0   ;;  %s3930_s0 = inlined_call_operand.vmem [shape: bf16[17,16], index: 0, kind: input, shape index: {}]   ;;  %s3931_s1 = inlined_call_operand.vmem [shape: bf16[256,17], index: 1, kind: input, shape index: {}]   ;;  %s3932_s2 = inlined_call_operand.vmem [shape: f32[256,1], index: 2, kind: input, shape index: {}]   ;;  %s3933_s3 = inlined_call_operand.vmem [shape: bf16[256,256], index: 3, kind: input, shape index: {}]   ;;  %s3934_s4 = inlined_call_operand.vmem [shape: f32[256,1], index: 4, kind: input, shape index: {}]   ;;  %s3935_s5 = inlined_call_operand.vmem [shape: bf16[256,256], index: 5, kind: input, shape index: {}]   ;;  %s3936_s6 = inlined_call_operand.vmem [shape: f32[256,1], index: 6, kind: input, shape index: {}]   ;;  %s3937_s7 = inlined_call_operand.vmem [shape: bf16[256,1], index: 7, kind: input, shape index: {}]   ;;  %s3938_s8 = inlined_call_operand.<no memory space> [shape: f32[1], index: 8, kind: input, shape index: {}]   ;;  %s3939_s9 = inlined_call_operand.hbm [shape: f32[1,16], index: 9, kind: output, shape index: {}]  }
   0x1   :  { %v100_v0 = vld [vmem:[%s3932_s2 + $0xf0] sm:$0xff]  ;;  %v98_v1 = vld [vmem:[%s3932_s2 + $0xe0] sm:$0xff]  ;;  %2612 = vset.pattern.permute.xlu2 %v2719_v3  ;;  %2611 = vset.pattern.permute.xlu1 %v2719_v3  ;;  %v69_v4 = vld [vmem:[%s3930_s0 + $0x8] sm:$0x1]  ;;  %v402_v6 = vsel %vm400_vm0, 65535, %v2719_v3 }
   0x2   :  { %v84_v2 = vld [vmem:[%s3932_s2 + $0x70] sm:$0xff]  ;;  %2610 = vset.pattern.permute.xlu0 %v2719_v3  ;;  %244 = vperm.xlu2 %2612, %v98_v1   ;;  %v347_v5 = vunpack.c.l.b16 %v69_v4  ;;  %v101_v9 = vld [vmem:[%s3932_s2 + $0xf8] sm:$0xff]  ;;  %v99_v10 = vld [vmem:[%s3932_s2 + $0xe8] sm:$0xff] }
   0x3   :  { %254 = vperm.xlu0 %2610, %v100_v0   ;;  %174 = vperm.xlu1 %2611, %v84_v2   ;;  %v85_v11 = vld [vmem:[%s3932_s2 + $0x78] sm:$0xff]  ;;  %v2450_v12 = vld [vmem:[%s3930_s0] sm:$0xff] }
   0x4   :  { %v349_v7 = vpack.c.b16 %v347_v5, %v347_v5 }
   0x6   :  { %v404_v8 = vand.u32 %v402_v6, %v349_v7 }
   0x8   :  { %412 = vmatpush.bf16.msra.mxu0 %v404_v8  ;;  %2594 = vmatpush.bf16.msra.mxu1 %v404_v8 }
   0x9   :  { %15 = vsyncpa [#allocation4], 0  ;;  %2595 = vmatpush.bf16.msra.mxu2 %v404_v8  ;;  %2596 = vmatpush.bf16.msra.mxu3 %v404_v8  ;;  %v2434_v13 = vld [vmem:[%s3931_s1] sm:$0xff]  ;;  %v2439_v14 = vld [vmem:[%s3931_s1 + $0x28] sm:$0xff]  ;;  %vm351_vm1 = vcmask 138240   ;;  %vm2003_vm2 = vcmask 130048  }
   0xa   :  { %249 = vperm.xlu2 %2612, %v99_v10   ;;  %v2444_v15 = vld [vmem:[%s3931_s1 + $0x50] sm:$0xff]  ;;  %v2446_v16 = vld [vmem:[%s3931_s1 + $0x60] sm:$0xff]  ;;  %v83_v18 = vld [vmem:[%s3932_s2 + $0x68] sm:$0xff]  ;;  %s2720_s18 = smov [#allocation3]   ;;  %vm2076_vm3 = vcmask 122880  }
   0xb   :  { %259 = vperm.xlu0 %2610, %v101_v9   ;;  %179 = vperm.xlu1 %2611, %v85_v11   ;;  %v96_v17 = vld [vmem:[%s3932_s2 + $0xd0] sm:$0xff]  ;;  %v82_v19 = vld [vmem:[%s3932_s2 + $0x60] sm:$0xff]  ;;  %v81_v20 = vld [vmem:[%s3932_s2 + $0x58] sm:$0xff]  ;;  %s2083_s19 = sshll.u32 %s2720_s18, 4  ;;  %s2084_s19 = int_to_ptr.vmem [resolvable:$true] %s2083_s19 }
   0xc   :  { %413 = vmatpush.bf16.msra.mxu0 %v2450_v12  ;;  %2597 = vmatpush.bf16.msra.mxu1 %v2450_v12  ;;  %v97_v21 = vld [vmem:[%s3932_s2 + $0xd8] sm:$0xff]  ;;  %v80_v22 = vld [vmem:[%s3932_s2 + $0x50] sm:$0xff]  ;;  %v2435_v23 = vld [vmem:[%s3931_s1 + $0x8] sm:$0xff] }
   0xd   :  { %2598 = vmatpush.bf16.msra.mxu2 %v2450_v12  ;;  %2599 = vmatpush.bf16.msra.mxu3 %v2450_v12  ;;  %v2440_v24 = vld [vmem:[%s3931_s1 + $0x30] sm:$0xff]  ;;  %v2445_v25 = vld [vmem:[%s3931_s1 + $0x58] sm:$0xff]  ;;  %v2447_v26 = vld [vmem:[%s3931_s1 + $0x68] sm:$0xff] }
   0xe   :  { %v78_v27 = vld [vmem:[%s3932_s2 + $0x40] sm:$0xff]  ;;  %v95_v29 = vld [vmem:[%s3932_s2 + $0xc8] sm:$0xff]  ;;  %v93_v30 = vld [vmem:[%s3932_s2 + $0xb8] sm:$0xff] }
   0xf   :  { %2162 = vmatmul.msk.bf16.vlgmr.msra.gmra.mxu0 %vm351_vm1, %v2434_v13  ;;  %2167 = vmatmul.msk.bf16.vlgmr.msra.gmra.mxu1 %vm351_vm1, %v2439_v14  ;;  %v94_v28 = vld [vmem:[%s3932_s2 + $0xc0] sm:$0xff]  ;;  %v92_v31 = vld [vmem:[%s3932_s2 + $0xb0] sm:$0xff]  ;;  %v79_v32 = vld [vmem:[%s3932_s2 + $0x48] sm:$0xff] }
  0x10   :  { %2172 = vmatmul.msk.bf16.vlgmr.msra.gmra.mxu2 %vm351_vm1, %v2444_v15  ;;  %2174 = vmatmul.msk.bf16.vlgmr.msra.gmra.mxu3 %vm351_vm1, %v2446_v16  ;;  %v2436_v33 = vld [vmem:[%s3931_s1 + $0x10] sm:$0xff]  ;;  %v2441_v34 = vld [vmem:[%s3931_s1 + $0x38] sm:$0xff]  ;;  %v90_v36 = vld [vmem:[%s3932_s2 + $0xa0] sm:$0xff] }
  0x11   :  { %v2448_v35 = vld [vmem:[%s3931_s1 + $0x70] sm:$0xff]  ;;  %v77_v37 = vld [vmem:[%s3932_s2 + $0x38] sm:$0xff]  ;;  %v75_v39 = vld [vmem:[%s3932_s2 + $0x28] sm:$0xff] }
  0x12   :  { %234 = vperm.xlu2 %2612, %v96_v17   ;;  %v76_v38 = vld [vmem:[%s3932_s2 + $0x30] sm:$0xff]  ;;  %v91_v40 = vld [vmem:[%s3932_s2 + $0xa8] sm:$0xff]  ;;  %v74_v41 = vld [vmem:[%s3932_s2 + $0x20] sm:$0xff] }
  0x13   :  { %169 = vperm.xlu1 %2611, %v83_v18   ;;  %164 = vperm.xlu0 %2610, %v82_v19   ;;  %v2437_v42 = vld [vmem:[%s3931_s1 + $0x18] sm:$0xff]  ;;  %v2442_v43 = vld [vmem:[%s3931_s1 + $0x40] sm:$0xff]  ;;  %v72_v45 = vld [vmem:[%s3932_s2 + $0x10] sm:$0xff] }
  0x14   :  { %v2449_v44 = vld [vmem:[%s3931_s1 + $0x78] sm:$0xff]  ;;  %v88_v46 = vld [vmem:[%s3932_s2 + $0x90] sm:$0xff]  ;;  %v87_v48 = vld [vmem:[%s3932_s2 + $0x88] sm:$0xff] }
  0x15   :  { %v89_v47 = vld [vmem:[%s3932_s2 + $0x98] sm:$0xff]  ;;  %v86_v49 = vld [vmem:[%s3932_s2 + $0x80] sm:$0xff]  ;;  %v2443_v52 = vld [vmem:[%s3931_s1 + $0x48] sm:$0xff] }
  0x16   :  { %v73_v50 = vld [vmem:[%s3932_s2 + $0x18] sm:$0xff]  ;;  %v2438_v51 = vld [vmem:[%s3931_s1 + $0x20] sm:$0xff]  ;;  %v71_v54 = vld [vmem:[%s3932_s2 + $0x8] sm:$0xff] }
  0x17   :  { %v575_v53 = vld [vmem:[%s3934_s4] sm:$0xff]  ;;  %v578_v56 = vld [vmem:[%s3934_s4 + $0x18] sm:$0xff]  ;;  %v577_v57 = vld [vmem:[%s3934_s4 + $0x10] sm:$0xff] }
  0x18   :  { %v70_v55 = vld [vmem:[%s3932_s2] sm:$0xff]  ;;  %v576_v58 = vld [vmem:[%s3934_s4 + $0x8] sm:$0xff]  ;;  %v581_v59 = vld [vmem:[%s3934_s4 + $0x30] sm:$0xff] }
  0x19   :  { %v580_v60 = vld [vmem:[%s3934_s4 + $0x28] sm:$0xff]  ;;  %v579_v61 = vld [vmem:[%s3934_s4 + $0x20] sm:$0xff]  ;;  %v582_v0 = vld [vmem:[%s3934_s4 + $0x38] sm:$0xff] }
  0x1a   :  { %159 = vperm.xlu2 %2612, %v81_v20   ;;  %v584_v62 = vld [vmem:[%s3934_s4 + $0x48] sm:$0xff]  ;;  %v583_v63 = vld [vmem:[%s3934_s4 + $0x40] sm:$0xff]  ;;  %v586_v2 = vld [vmem:[%s3934_s4 + $0x58] sm:$0xff] }
  0x1b   :  { %239 = vperm.xlu0 %2610, %v97_v21   ;;  %154 = vperm.xlu1 %2611, %v80_v22   ;;  %v587_v1 = vld [vmem:[%s3934_s4 + $0x60] sm:$0xff]  ;;  %v585_v3 = vld [vmem:[%s3934_s4 + $0x50] sm:$0xff]  ;;  %v590_v4 = vld [vmem:[%s3934_s4 + $0x78] sm:$0xff] }
  0x1c   :  { %v589_v5 = vld [vmem:[%s3934_s4 + $0x70] sm:$0xff]  ;;  %v588_v6 = vld [vmem:[%s3934_s4 + $0x68] sm:$0xff]  ;;  %v591_v11 = vld [vmem:[%s3934_s4 + $0x80] sm:$0xff] }
  0x1d   :  { %v593_v9 = vld [vmem:[%s3934_s4 + $0x90] sm:$0xff]  ;;  %v592_v10 = vld [vmem:[%s3934_s4 + $0x88] sm:$0xff]  ;;  %v603_v14 = vld [vmem:[%s3934_s4 + $0xe0] sm:$0xff] }
  0x1e   :  { %v606_v15 = vld [vmem:[%s3934_s4 + $0xf8] sm:$0xff]  ;;  %v605_v16 = vld [vmem:[%s3934_s4 + $0xf0] sm:$0xff] }
  0x1f   :  { %2163 = vmatmul.msk.bf16.gmra.mxu0 %vm351_vm1, %v2435_v23  ;;  %2168 = vmatmul.msk.bf16.gmra.mxu1 %vm351_vm1, %v2440_v24  ;;  %v602_v22 = vld [vmem:[%s3934_s4 + $0xd8] sm:$0xff]  ;;  %v601_v23 = vld [vmem:[%s3934_s4 + $0xd0] sm:$0xff]  ;;  %v604_v24 = vld [vmem:[%s3934_s4 + $0xe8] sm:$0xff] }
  0x20   :  { %2173 = vmatmul.msk.bf16.gmra.mxu2 %vm351_vm1, %v2445_v25  ;;  %2175 = vmatmul.msk.bf16.gmra.mxu3 %vm351_vm1, %v2447_v26 }
  0x22   :  { %144 = vperm.xlu2 %2612, %v78_v27  }
  0x23   :  { %224 = vperm.xlu0 %2610, %v94_v28   ;;  %229 = vperm.xlu1 %2611, %v95_v29  }
  0x2a   :  { %219 = vperm.xlu2 %2612, %v93_v30   ;;  %v597_v30 = vld [vmem:[%s3934_s4 + $0xb0] sm:$0xff] }
  0x2b   :  { %214 = vperm.xlu1 %2611, %v92_v31   ;;  %149 = vperm.xlu0 %2610, %v79_v32   ;;  %v600_v31 = vld [vmem:[%s3934_s4 + $0xc8] sm:$0xff]  ;;  %v599_v32 = vld [vmem:[%s3934_s4 + $0xc0] sm:$0xff] }
  0x2f   :  { %2164 = vmatmul.msk.bf16.gmra.mxu0 %vm351_vm1, %v2436_v33  ;;  %2169 = vmatmul.msk.bf16.gmra.mxu1 %vm351_vm1, %v2441_v34 }
  0x30   :  { %2176 = vmatmul.msk.bf16.gmra.mxu3 %vm351_vm1, %v2448_v35 }
  0x32   :  { %204 = vperm.xlu2 %2612, %v90_v36  }
  0x33   :  { %139 = vperm.xlu1 %2611, %v77_v37   ;;  %134 = vperm.xlu0 %2610, %v76_v38   ;;  %v596_v38 = vld [vmem:[%s3934_s4 + $0xa8] sm:$0xff] }
  0x3a   :  { %129 = vperm.xlu2 %2612, %v75_v39   ;;  %v595_v39 = vld [vmem:[%s3934_s4 + $0xa0] sm:$0xff] }
  0x3b   :  { %209 = vperm.xlu0 %2610, %v91_v40   ;;  %124 = vperm.xlu1 %2611, %v74_v41   ;;  %v598_v40 = vld [vmem:[%s3934_s4 + $0xb8] sm:$0xff] }
  0x3f   :  { %2165 = vmatmul.msk.bf16.gmra.mxu0 %vm351_vm1, %v2437_v42  ;;  %2170 = vmatmul.msk.bf16.gmra.mxu1 %vm351_vm1, %v2442_v43 }
  0x40   :  { %2177 = vmatmul.msk.bf16.gmra.mxu3 %vm351_vm1, %v2449_v44 }
  0x42   :  { %114 = vperm.xlu2 %2612, %v72_v45  }
  0x43   :  { %194 = vperm.xlu0 %2610, %v88_v46   ;;  %199 = vperm.xlu1 %2611, %v89_v47   ;;  %v1186_v47 = vld [vmem:[%s3936_s6 + $0x8] sm:$0xff] }
  0x4a   :  { %189 = vperm.xlu2 %2612, %v87_v48   ;;  %v1185_v48 = vld [vmem:[%s3936_s6] sm:$0xff] }
  0x4b   :  { %184 = vperm.xlu1 %2611, %v86_v49   ;;  %119 = vperm.xlu0 %2610, %v73_v50   ;;  %v594_v49 = vld [vmem:[%s3934_s4 + $0x98] sm:$0xff]  ;;  %s2085_s4 = sshll.u32 %s3939_s9, 4  ;;  %s2086_s4 = int_to_ptr.hbm [resolvable:$true] %s2085_s4 }
  0x4f   :  { %2166 = vmatmul.msk.bf16.gmra.mxu0 %vm351_vm1, %v2438_v51  ;;  %2171 = vmatmul.msk.bf16.gmra.mxu1 %vm351_vm1, %v2443_v52 }
  0x52   :  { %609 = vperm.xlu2 %2612, %v575_v53  }
  0x53   :  { %109 = vperm.xlu1 %2611, %v71_v54   ;;  %104 = vperm.xlu0 %2610, %v70_v55   ;;  %v1189_v55 = vld [vmem:[%s3936_s6 + $0x20] sm:$0xff] }
  0x5a   :  { %624 = vperm.xlu2 %2612, %v578_v56   ;;  %v1188_v56 = vld [vmem:[%s3936_s6 + $0x18] sm:$0xff] }
  0x5b   :  { %619 = vperm.xlu1 %2611, %v577_v57   ;;  %614 = vperm.xlu0 %2610, %v576_v58   ;;  %v1187_v57 = vld [vmem:[%s3936_s6 + $0x10] sm:$0xff] }
  0x5c   :  { %v3011_v17 = vpop.permute.xlu2 %244 }
  0x62   :  { %639 = vperm.xlu2 %2612, %v581_v59  }
  0x63   :  { %634 = vperm.xlu1 %2611, %v580_v60   ;;  %629 = vperm.xlu0 %2610, %v579_v61  }
  0x64   :  { %v3028_v25 = vpop.permute.xlu2 %249 }
  0x6a   :  { %654 = vperm.xlu2 %2612, %v584_v62  }
  0x6b   :  { %649 = vperm.xlu1 %2611, %v583_v63   ;;  %644 = vperm.xlu0 %2610, %v582_v0  }
  0x6c   :  { %v3049_v37 = vpop.permute.xlu2 %234 }
  0x72   :  { %669 = vperm.xlu2 %2612, %v587_v1  }
  0x73   :  { %664 = vperm.xlu1 %2611, %v586_v2   ;;  %659 = vperm.xlu0 %2610, %v585_v3  }
  0x74   :  { %v160_v46 = vpop.permute.xlu2 %159 }
  0x75   :  { %v2985_v7 = vpop.permute.xlu0 %254  ;;  %v2987_v8 = vpop.permute.xlu1 %174 }
  0x7a   :  { %684 = vperm.xlu2 %2612, %v590_v4  }
  0x7b   :  { %679 = vperm.xlu1 %2611, %v589_v5   ;;  %674 = vperm.xlu0 %2610, %v588_v6   ;;  %v1192_v6 = vld [vmem:[%s3936_s6 + $0x38] sm:$0xff] }
  0x7c   :  { %v3094_v58 = vpop.permute.xlu2 %144 }
  0x7d   :  { %v2998_v12 = vpop.permute.xlu0 %259  ;;  %v3000_v13 = vpop.permute.xlu1 %179 }
  0x82   :  { %699 = vperm.xlu2 %2612, %v593_v9   ;;  %v1191_v9 = vld [vmem:[%s3936_s6 + $0x30] sm:$0xff] }
  0x83   :  { %694 = vperm.xlu1 %2611, %v592_v10   ;;  %689 = vperm.xlu0 %2610, %v591_v11   ;;  %v1190_v10 = vld [vmem:[%s3936_s6 + $0x28] sm:$0xff] }
  0x85   :  { %v3017_v20 = vpop.permute.xlu0 %164  ;;  %v170_v21 = vpop.permute.xlu1 %169 }
  0x8a   :  { %749 = vperm.xlu2 %2612, %v603_v14  }
  0x8b   :  { %764 = vperm.xlu1 %2611, %v606_v15   ;;  %759 = vperm.xlu0 %2610, %v605_v16   ;;  %v3117_v16 = vpop.permute.xlu2 %219 }
  0x8c   :  { %v3013_v18 = vpop.f32.mrf.mxu0  ;;  %v3015_v19 = vpop.f32.mrf.mxu1 }
  0x8d   :  { %v3034_v29 = vpop.permute.xlu0 %239  ;;  %v155_v33 = vpop.permute.xlu1 %154 }
  0x92   :  { %744 = vperm.xlu2 %2612, %v602_v22  }
  0x93   :  { %v3030_v26 = vpop.f32.mrf.mxu3  ;;  %739 = vperm.xlu1 %2611, %v601_v23   ;;  %754 = vperm.xlu0 %2610, %v604_v24   ;;  %v3100_v0 = vpop.f32.mrf.mxu2 }
  0x94   :  { %v3032_v27 = vpop.f32.mrf.mxu0  ;;  %v442_v28 = vpop.f32.mrf.mxu1 }
  0x95   :  { %v3060_v41 = vpop.permute.xlu0 %224  ;;  %v3062_v42 = vpop.permute.xlu1 %229  ;;  %v443_v14 = vadd.f32 %v442_v28, %v160_v46 }
  0x96   :  { %v3138_v46 = vpop.permute.xlu2 %204 }
  0x97   :  { %v506_v24 = vmax.f32 %v443_v14, 0.0 }
  0x9a   :  { %719 = vperm.xlu2 %2612, %v597_v30  }
  0x9b   :  { %v3045_v34 = vpop.f32.mrf.mxu3  ;;  %734 = vperm.xlu1 %2611, %v600_v31   ;;  %729 = vperm.xlu0 %2610, %v599_v32   ;;  %v3126_v28 = vpop.f32.mrf.mxu2 }
  0x9c   :  { %v3047_v35 = vpop.f32.mrf.mxu0  ;;  %v445_v36 = vpop.f32.mrf.mxu1 }
  0x9d   :  { %v3077_v50 = vpop.permute.xlu0 %149  ;;  %v3083_v54 = vpop.permute.xlu1 %214 }
  0xa2   :  { %714 = vperm.xlu2 %2612, %v596_v38  }
  0xa3   :  { %v3064_v43 = vpop.f32.mrf.mxu3  ;;  %709 = vperm.xlu1 %2611, %v595_v39   ;;  %724 = vperm.xlu0 %2610, %v598_v40  }
  0xa4   :  { %v3066_v44 = vpop.f32.mrf.mxu0  ;;  %v447_v45 = vpop.f32.mrf.mxu1 }
  0xa5   :  { %v448_v1 = vadd.f32 %v447_v45, %v170_v21  ;;  %v3102_v2 = vpop.permute.xlu0 %134  ;;  %v3104_v3 = vpop.permute.xlu1 %139 }
  0xa7   :  { %v508_v15 = vmax.f32 %v448_v1, 0.0 }
  0xaa   :  { %1224 = vperm.xlu2 %2612, %v1186_v47   ;;  %v1198_v47 = vld [vmem:[%s3936_s6 + $0x68] sm:$0xff] }
  0xab   :  { %v3079_v51 = vpop.f32.mrf.mxu3  ;;  %1219 = vperm.xlu1 %2611, %v1185_v48   ;;  %704 = vperm.xlu0 %2610, %v594_v49   ;;  %v1197_v48 = vld [vmem:[%s3936_s6 + $0x60] sm:$0xff]  ;;  %v1196_v49 = vld [vmem:[%s3936_s6 + $0x58] sm:$0xff] }
  0xac   :  { %v3081_v52 = vpop.f32.mrf.mxu0  ;;  %v450_v53 = vpop.f32.mrf.mxu1 }
  0xad   :  { %v451_v59 = vadd.f32 %v450_v53, %v2987_v8  ;;  %v446_v8 = vadd.f32 %v445_v36, %v3017_v20  ;;  %v3128_v32 = vpop.permute.xlu0 %209  ;;  %v1193_v36 = vld [vmem:[%s3936_s6 + $0x40] sm:$0xff]  ;;  %v3136_v38 = vpop.permute.xlu1 %124 }
  0xaf   :  { %v509_v4 = vmax.f32 %v451_v59, 0.0  ;;  %v507_v20 = vmax.f32 %v446_v8, 0.0 }
  0xb1   :  { %v565_v30 = vpack.c.bf16 %v508_v15, %v507_v20 }
  0xb2   :  { %1239 = vperm.xlu2 %2612, %v1189_v55   ;;  %v470_v55 = vpop.f32.mrf.mxu2 }
  0xb3   :  { %v485_v60 = vpop.f32.mrf.mxu3  ;;  %1234 = vperm.xlu1 %2611, %v1188_v56   ;;  %1229 = vperm.xlu0 %2610, %v1187_v57  }
  0xb4   :  { %v3097_v61 = vpop.f32.mrf.mxu0  ;;  %v452_v62 = vpop.f32.mrf.mxu1 }
  0xb5   :  { %v453_v63 = vadd.f32 %v452_v62, %v3000_v13  ;;  %v441_v13 = vadd.f32 %v3015_v19, %v155_v33  ;;  %v1195_v19 = vld [vmem:[%s3936_s6 + $0x50] sm:$0xff]  ;;  %v1194_v33 = vld [vmem:[%s3936_s6 + $0x48] sm:$0xff]  ;;  %v3151_v56 = vpop.permute.xlu0 %194  ;;  %v3154_v59 = vpop.permute.xlu1 %199 }
  0xb7   :  { %v510_v5 = vmax.f32 %v453_v63, 0.0  ;;  %v505_v23 = vmax.f32 %v441_v13, 0.0 }
  0xb9   :  { %v566_v11 = vpack.c.bf16 %v510_v5, %v509_v4  ;;  %v564_v39 = vpack.c.bf16 %v506_v24, %v505_v23  ;;  %v486_v5 = vadd.f32 %v485_v60, %v3011_v17  ;;  %v481_v17 = vadd.f32 %v3064_v43, %v3049_v37 }
  0xba   :  { %1254 = vperm.xlu2 %2612, %v1192_v6   ;;  %v476_v43 = vadd.f32 %v3030_v26, %v3060_v41  ;;  %v1203_v26 = vld [vmem:[%s3936_s6 + $0x90] sm:$0xff]  ;;  %v1202_v41 = vld [vmem:[%s3936_s6 + $0x88] sm:$0xff] }
  0xbb   :  { %v487_v21 = vpop.f32.mrf.mxu3  ;;  %1249 = vperm.xlu1 %2611, %v1191_v9   ;;  %1244 = vperm.xlu0 %2610, %v1190_v10   ;;  %v130_v9 = vpop.permute.xlu2 %129  ;;  %v483_v10 = vadd.f32 %v3079_v51, %v3034_v29  ;;  %v523_v60 = vmax.f32 %v486_v5, 0.0  ;;  %v478_v29 = vadd.f32 %v3045_v34, %v3062_v42  ;;  %v1204_v34 = vld [vmem:[%s3936_s6 + $0x98] sm:$0xff] }
  0xbc   :  { %927 = vmatpush.bf16.msrb.mxu1 %v566_v11  ;;  %v3119_v22 = vpop.f32.mrf.mxu0  ;;  %v3121_v31 = vpop.f32.mrf.mxu1  ;;  %v488_v63 = vadd.f32 %v487_v21, %v3028_v25  ;;  %v1200_v25 = vld [vmem:[%s3936_s6 + $0x78] sm:$0xff] }
  0xbd   :  { %v472_v51 = vpop.f32.mrf.mxu2  ;;  %v522_v21 = vmax.f32 %v483_v10, 0.0  ;;  %v3177_v24 = vpop.permute.xlu1 %184  ;;  %v520_v42 = vmax.f32 %v478_v29, 0.0 }
  0xbe   :  { %v524_v11 = vmax.f32 %v488_v63, 0.0  ;;  %v456_v29 = vadd.f32 %v3121_v31, %v3177_v24  ;;  %v1208_v31 = vld [vmem:[%s3936_s6 + $0xb8] sm:$0xff]  ;;  %v2452_v24 = vld [vmem:[%s3933_s3 + $0x4] sm:$0xf0] }
  0xc0   :  { %928 = vmatpush.bf16.msrb.mxu1 %v565_v30  ;;  %v573_v23 = vpack.c.bf16 %v524_v11, %v523_v60  ;;  %v120_v30 = vpop.permute.xlu0 %119 }
  0xc2   :  { %1269 = vperm.xlu2 %2612, %v1195_v19  }
  0xc3   :  { %v490_v40 = vpop.f32.mrf.mxu3  ;;  %1264 = vperm.xlu1 %2611, %v1194_v33   ;;  %1259 = vperm.xlu0 %2610, %v1193_v36  }
  0xc4   :  { %929 = vmatpush.bf16.msrb.mxu1 %v564_v39  ;;  %v432_v45 = vpop.f32.mrf.mxu0  ;;  %v3149_v53 = vpop.f32.mrf.mxu1  ;;  %v491_v57 = vadd.f32 %v490_v40, %v2985_v7  ;;  %v1201_v7 = vld [vmem:[%s3936_s6 + $0x80] sm:$0xff]  ;;  %v473_v39 = vadd.f32 %v472_v51, %v3117_v16  ;;  %v431_v40 = vadd.f32 %v3119_v22, %v3102_v2  ;;  %v426_v2 = vadd.f32 %v3081_v52, %v3136_v38 }
  0xc5   :  { %v433_v19 = vadd.f32 %v432_v45, %v3104_v3  ;;  %v115_v3 = vpop.permute.xlu2 %114  ;;  %v428_v45 = vadd.f32 %v3097_v61, %v130_v9  ;;  %v466_v61 = vadd.f32 %v3100_v0, %v3138_v46  ;;  %v110_v38 = vpop.permute.xlu1 %109  ;;  %v1205_v46 = vld [vmem:[%s3936_s6 + $0xa0] sm:$0xff] }
  0xc6   :  { %v525_v6 = vmax.f32 %v491_v57, 0.0  ;;  %v518_v22 = vmax.f32 %v473_v39, 0.0  ;;  %v468_v57 = vadd.f32 %v3126_v28, %v3128_v32  ;;  %v499_v52 = vmax.f32 %v426_v2, 0.0  ;;  %v1207_v28 = vld [vmem:[%s3936_s6 + $0xb0] sm:$0xff]  ;;  %v2190_v2 = vld [vmem:[%s3933_s3 + $0x18] sm:$0xf0] }
  0xc7   :  { %v502_v16 = vmax.f32 %v433_v19, 0.0  ;;  %v421_v32 = vadd.f32 %v3047_v35, %v115_v3  ;;  %v1211_v39 = vld [vmem:[%s3936_s6 + $0xd0] sm:$0xff] }
  0xc8   :  { %v2580_v3 = vld [vmem:[%s3937_s7 + $0x10] sm:$0xff]  }
  0xca   :  { %1284 = vperm.xlu2 %2612, %v1198_v47  }
  0xcb   :  { %v492_v62 = vpop.f32.mrf.mxu3  ;;  %1279 = vperm.xlu1 %2611, %v1197_v48   ;;  %1274 = vperm.xlu0 %2610, %v1196_v49   ;;  %v519_v48 = vmax.f32 %v476_v43, 0.0  ;;  %v471_v49 = vadd.f32 %v470_v55, %v3083_v54  ;;  %v2451_v43 = vld [vmem:[%s3933_s3 + $0x4] sm:$0xf] }
  0xcc   :  { %v493_v1 = vadd.f32 %v492_v62, %v2998_v12  ;;  %v435_v4 = vpop.f32.mrf.mxu0  ;;  %v1199_v12 = vld [vmem:[%s3936_s6 + $0x70] sm:$0xff]  ;;  %v3173_v15 = vpop.f32.mrf.mxu1  ;;  %v501_v62 = vmax.f32 %v431_v40, 0.0  ;;  %v1216_v40 = vld [vmem:[%s3936_s6 + $0xf8] sm:$0xff] }
  0xcd   :  { %v436_v14 = vadd.f32 %v435_v4, %v3094_v58  ;;  %v521_v58 = vmax.f32 %v481_v17, 0.0  ;;  %v571_v63 = vpack.c.bf16 %v520_v42, %v519_v48  ;;  %v517_v55 = vmax.f32 %v471_v49, 0.0  ;;  %v1212_v42 = vld [vmem:[%s3936_s6 + $0xd8] sm:$0xff]  ;;  %v2516_v48 = vld [vmem:[%s3937_s7] sm:$0xff]  }
  0xce   :  { %v526_v8 = vmax.f32 %v493_v1, 0.0  ;;  %v500_v1 = vmax.f32 %v428_v45, 0.0  ;;  %v423_v4 = vadd.f32 %v3066_v44, %v120_v30  ;;  %v562_v5 = vpack.c.bf16 %v502_v16, %v501_v62  ;;  %v1206_v44 = vld [vmem:[%s3936_s6 + $0xa8] sm:$0xff]  ;;  %v2453_v16 = vld [vmem:[%s3933_s3 + $0x14] sm:$0xf] }
  0xcf   :  { %v503_v33 = vmax.f32 %v436_v14, 0.0  ;;  %v570_v0 = vpack.c.bf16 %v518_v22, %v517_v55  ;;  %v511_v30 = vmax.f32 %v456_v29, 0.0  ;;  %v1214_v45 = vld [vmem:[%s3936_s6 + $0xe8] sm:$0xff]  ;;  %v2525_v22 = vunpack.c.l.bf16 %v2580_v3 }
  0xd0   :  { %v574_v13 = vpack.c.bf16 %v526_v8, %v525_v6  ;;  %v105_v6 = vpop.permute.xlu0 %104  ;;  %v516_v8 = vmax.f32 %v468_v57, 0.0  ;;  %v561_v10 = vpack.c.bf16 %v500_v1, %v499_v52  ;;  %v498_v11 = vmax.f32 %v423_v4, 0.0  ;;  %v2583_v52 = vld [vmem:[%s3937_s7 + $0x28] sm:$0xff]  }
  0xd1   :  { %v416_v35 = vadd.f32 %v3013_v18, %v105_v6  ;;  %v2526_v57 = vunpack.c.h.bf16 %v2580_v3  ;;  %v2518_v1 = vunpack.c.h.bf16 %v2516_v48  ;;  %v2581_v6 = vld [vmem:[%s3937_s7 + $0x18] sm:$0xff]  }
  0xd2   :  { %1016 = vmatpush.bf16.msrb.mxu2 %v574_v13  ;;  %1299 = vperm.xlu2 %2612, %v1201_v7   ;;  %v515_v7 = vmax.f32 %v466_v61, 0.0  ;;  %v418_v13 = vadd.f32 %v3032_v27, %v110_v38  ;;  %v2517_v61 = vunpack.c.l.bf16 %v2516_v48  ;;  %v2582_v38 = vld [vmem:[%s3937_s7 + $0x20] sm:$0xff]  }
  0xd3   :  { %1294 = vperm.xlu1 %2611, %v1200_v25   ;;  %1289 = vperm.xlu0 %2610, %v1199_v12   ;;  %v190_v25 = vpop.permute.xlu2 %189  ;;  %v497_v12 = vmax.f32 %v421_v32, 0.0  ;;  %v495_v51 = vmax.f32 %v416_v35, 0.0  ;;  %v2623_v55 = vpack.i.bf16 %v2526_v57, %v2525_v22  ;;  %v2538_v32 = vunpack.c.h.bf16 %v2583_v52  ;;  %v2586_v35 = vld [vmem:[%s3937_s7 + $0x40] sm:$0xff]  }
  0xd4   :  { %v437_v20 = vpop.f32.mrf.mxu0  ;;  %v462_v54 = vpop.f32.mrf.mxu1  ;;  %v458_v17 = vadd.f32 %v3149_v53, %v190_v25  ;;  %v569_v14 = vpack.c.bf16 %v516_v8, %v515_v7  ;;  %v496_v27 = vmax.f32 %v418_v13, 0.0  ;;  %v2533_v8 = vunpack.c.l.bf16 %v2582_v38  ;;  %v2456_v13 = vld [vmem:[%s3933_s3 + $0x24] sm:$0xf0]  ;;  %v2584_v25 = vld [vmem:[%s3937_s7 + $0x30] sm:$0xff]  }
  0xd5   :  { %v438_v37 = vadd.f32 %v437_v20, %v3077_v50  ;;  %v572_v50 = vpack.c.bf16 %v522_v21, %v521_v58  ;;  %v463_v9 = vadd.f32 %v462_v54, %v3154_v59  ;;  %v461_v59 = vadd.f32 %v3173_v15, %v3151_v56  ;;  %v1210_v56 = vld [vmem:[%s3936_s6 + $0xc8] sm:$0xff]  ;;  %v1209_v15 = vld [vmem:[%s3936_s6 + $0xc0] sm:$0xff] }
  0xd6   :  { %1017 = vmatpush.bf16.msrb.mxu2 %v573_v23  ;;  %v560_v21 = vpack.c.bf16 %v498_v11, %v497_v12  ;;  %v512_v53 = vmax.f32 %v458_v17, 0.0  ;;  %v2180_v23 = vld [vmem:[%s3933_s3] sm:$0xf]  ;;  %v2182_v58 = vld [vmem:[%s3933_s3 + $0x8] sm:$0xf0]  ;;  %v2193_v54 = vor.u32 %v2453_v16, %v2190_v2  ;;  %v2550_v29 = vunpack.c.h.bf16 %v2586_v35 }
  0xd7   :  { %v504_v36 = vmax.f32 %v438_v37, 0.0  ;;  %v514_v60 = vmax.f32 %v463_v9, 0.0  ;;  %v513_v18 = vmax.f32 %v461_v59, 0.0  ;;  %v559_v37 = vpack.c.bf16 %v496_v27, %v495_v51  ;;  %v2196_v11 = vld [vmem:[%s3933_s3 + $0x20] sm:$0xf]  ;;  %v2585_v59 = vld [vmem:[%s3937_s7 + $0x38] sm:$0xff]  }
  0xd8   :  { %v2181_v19 = vor.u32 %v2452_v24, %v2180_v23  ;;  %v2534_v9 = vunpack.c.h.bf16 %v2582_v38  ;;  %v2197_v12 = vor.u32 %v2456_v13, %v2196_v11  ;;  %v2455_v17 = vld [vmem:[%s3933_s3 + $0x24] sm:$0xf]  ;;  %v2545_v27 = vunpack.c.l.bf16 %v2585_v59  ;;  %v2588_v23 = vld [vmem:[%s3937_s7 + $0x50] sm:$0xff]   ;;  %v2587_v24 = vld [vmem:[%s3937_s7 + $0x48] sm:$0xff]  }
  0xd9   :  { %v563_v47 = vpack.c.bf16 %v504_v36, %v503_v33  ;;  %v568_v20 = vpack.c.bf16 %v514_v60, %v513_v18  ;;  %v567_v33 = vpack.c.bf16 %v512_v53, %v511_v30  ;;  %v2185_v36 = vor.u32 %v2451_v43, %v2182_v58  ;;  %v2198_v60 = vld [vmem:[%s3933_s3 + $0x28] sm:$0xf0]  ;;  %v2460_v38 = vld [vmem:[%s3933_s3 + $0x44] sm:$0xf0]  ;;  %v2228_v11 = vld [vmem:[%s3933_s3 + $0x60] sm:$0xf] }
  0xda   :  { %1018 = vmatpush.bf16.msrb.mxu2 %v572_v50  ;;  %1314 = vperm.xlu2 %2612, %v1204_v34   ;;  %v1213_v34 = vld [vmem:[%s3936_s6 + $0xe0] sm:$0xff]  ;;  %v1215_v50 = vld [vmem:[%s3936_s6 + $0xf0] sm:$0xff]  ;;  %v2633_v7 = vpack.i.bf16 %v2534_v9, %v2533_v8  ;;  %v2546_v51 = vunpack.c.h.bf16 %v2585_v59  ;;  %v2541_v18 = vunpack.c.l.bf16 %v2584_v25  ;;  %v2557_v43 = vunpack.c.l.bf16 %v2588_v23  ;;  %v2464_v13 = vld [vmem:[%s3933_s3 + $0x64] sm:$0xf0] }
  0xdb   :  { %1309 = vperm.xlu1 %2611, %v1203_v26   ;;  %1304 = vperm.xlu0 %2610, %v1202_v41   ;;  %v2188_v26 = vld [vmem:[%s3933_s3 + $0x10] sm:$0xf]  ;;  %v2454_v41 = vld [vmem:[%s3933_s3 + $0x14] sm:$0xf0]  ;;  %v2558_v58 = vunpack.c.h.bf16 %v2588_v23  ;;  %v2230_v59 = vld [vmem:[%s3933_s3 + $0x68] sm:$0xf0] }
  0xdc   :  { %930 = vmatpush.bf16.msrb.mxu1 %v563_v47  ;;  %v2579_v47 = vld [vmem:[%s3937_s7 + $0x8] sm:$0xff]   ;;  %v2189_v49 = vor.u32 %v2454_v41, %v2188_v26  ;;  %v2648_v53 = vpack.i.bf16 %v2546_v51, %v2545_v27  ;;  %v2590_v41 = vld [vmem:[%s3937_s7 + $0x60] sm:$0xff]   ;;  %v2220_v9 = vld [vmem:[%s3933_s3 + $0x50] sm:$0xf] }
  0xdd   :  { %v2521_v62 = vunpack.c.l.bf16 %v2579_v47  ;;  %v2591_v26 = vld [vmem:[%s3937_s7 + $0x68] sm:$0xff]   ;;  %v2565_v22 = vunpack.c.l.bf16 %v2590_v41  ;;  %v2566_v57 = vunpack.c.h.bf16 %v2590_v41 }
  0xde   :  { %1019 = vmatpush.bf16.msrb.mxu2 %v571_v63  ;;  %v2522_v63 = vunpack.c.h.bf16 %v2579_v47  ;;  %v2206_v47 = vld [vmem:[%s3933_s3 + $0x38] sm:$0xf0]  ;;  %v2569_v16 = vunpack.c.l.bf16 %v2591_v26  ;;  %v2570_v2 = vunpack.c.h.bf16 %v2591_v26 }
  0xe0   :  { %931 = vmatpush.bf16.msrb.mxu1 %v562_v5  ;;  %v2618_v4 = vpack.i.bf16 %v2522_v63, %v2521_v62  ;;  %v2613_v5 = vpack.i.bf16 %v2518_v1, %v2517_v61  ;;  %v2678_v61 = vpack.i.bf16 %v2570_v2, %v2569_v16  ;;  %v2673_v1 = vpack.i.bf16 %v2566_v57, %v2565_v22  ;;  %v2260_v57 = vld [vmem:[%s3933_s3 + $0xa0] sm:$0xf] }
  0xe2   :  { %1020 = vmatpush.bf16.msrb.mxu2 %v570_v0  ;;  %1329 = vperm.xlu2 %2612, %v1207_v28   ;;  %v2537_v28 = vunpack.c.l.bf16 %v2583_v52  ;;  %v2529_v0 = vunpack.c.l.bf16 %v2581_v6  ;;  %v2212_v52 = vld [vmem:[%s3933_s3 + $0x40] sm:$0xf] }
  0xe3   :  { %1324 = vperm.xlu1 %2611, %v1206_v44   ;;  %1319 = vperm.xlu0 %2610, %v1205_v46   ;;  %v2530_v44 = vunpack.c.h.bf16 %v2581_v6  ;;  %v2459_v6 = vld [vmem:[%s3933_s3 + $0x44] sm:$0xf] }
  0xe4   :  { %932 = vmatpush.bf16.msrb.mxu1 %v561_v10  ;;  %v2638_v46 = vpack.i.bf16 %v2538_v32, %v2537_v28  ;;  %v2214_v28 = vld [vmem:[%s3933_s3 + $0x48] sm:$0xf0]  ;;  %v2213_v32 = vor.u32 %v2460_v38, %v2212_v52 }
  0xe5   :  { %v2628_v10 = vpack.i.bf16 %v2530_v44, %v2529_v0  ;;  %v2217_v8 = vor.u32 %v2459_v6, %v2214_v28  ;;  %v2462_v0 = vld [vmem:[%s3933_s3 + $0x54] sm:$0xf0]  ;;  %v2461_v44 = vld [vmem:[%s3933_s3 + $0x54] sm:$0xf] }
  0xe6   :  { %1021 = vmatpush.bf16.msrb.mxu2 %v569_v14  ;;  %v2549_v14 = vunpack.c.l.bf16 %v2586_v35  ;;  %v2463_v35 = vld [vmem:[%s3933_s3 + $0x64] sm:$0xf] }
  0xe8   :  { %933 = vmatpush.bf16.msrb.mxu1 %v560_v21  ;;  %v2542_v21 = vunpack.c.h.bf16 %v2584_v25  ;;  %v2229_v25 = vor.u32 %v2464_v13, %v2228_v11  ;;  %v2473_v13 = vld [vmem:[%s3933_s3 + $0xb4] sm:$0xf] }
  0xea   :  { %1022 = vmatpush.bf16.msrb.mxu2 %v568_v20  ;;  %1344 = vperm.xlu2 %2612, %v1210_v56   ;;  %v2201_v56 = vor.u32 %v2455_v17, %v2198_v60  ;;  %v2643_v20 = vpack.i.bf16 %v2542_v21, %v2541_v18  ;;  %v2236_v17 = vld [vmem:[%s3933_s3 + $0x70] sm:$0xf]  ;;  %v2466_v60 = vld [vmem:[%s3933_s3 + $0x74] sm:$0xf0]  ;;  %v2244_v18 = vld [vmem:[%s3933_s3 + $0x80] sm:$0xf] }
  0xeb   :  { %1339 = vperm.xlu1 %2611, %v1209_v15   ;;  %1334 = vperm.xlu0 %2610, %v1208_v31   ;;  %v2653_v15 = vpack.i.bf16 %v2550_v29, %v2549_v14  ;;  %v2589_v31 = vld [vmem:[%s3937_s7 + $0x58] sm:$0xff]   ;;  %v2465_v14 = vld [vmem:[%s3933_s3 + $0x74] sm:$0xf]  ;;  %v2237_v27 = vor.u32 %v2466_v60, %v2236_v17  ;;  %v2468_v21 = vld [vmem:[%s3933_s3 + $0x84] sm:$0xf0] }
  0xec   :  { %934 = vmatpush.bf16.msrb.mxu1 %v559_v37  ;;  %v2561_v30 = vunpack.c.l.bf16 %v2589_v31  ;;  %v2562_v37 = vunpack.c.h.bf16 %v2589_v31  ;;  %v2238_v29 = vld [vmem:[%s3933_s3 + $0x78] sm:$0xf0] }
  0xed   :  { %v2241_v51 = vor.u32 %v2465_v14, %v2238_v29 }
  0xee   :  { %1023 = vmatpush.bf16.msrb.mxu2 %v567_v33  ;;  %v2554_v33 = vunpack.c.h.bf16 %v2587_v24 }
  0xef   :  { %935 = vmatmul.bf16.vlgmr.msrb.gmra.mxu1 %v2181_v19  ;;  %v2553_v19 = vunpack.c.l.bf16 %v2587_v24 }
  0xf1   :  { %1024 = vmatmul.bf16.vlgmr.msrb.gmra.mxu2 %v2185_v36  ;;  %v2668_v36 = vpack.i.bf16 %v2562_v37, %v2561_v30 }
  0xf2   :  { %1359 = vperm.xlu2 %2612, %v1213_v34   ;;  %v2663_v34 = vpack.i.bf16 %v2558_v58, %v2557_v43  ;;  %v2252_v58 = vld [vmem:[%s3933_s3 + $0x90] sm:$0xf] }
  0xf3   :  { %1354 = vperm.xlu1 %2611, %v1212_v42   ;;  %1349 = vperm.xlu0 %2610, %v1211_v39   ;;  %v2658_v42 = vpack.i.bf16 %v2554_v33, %v2553_v19  ;;  %v2204_v39 = vld [vmem:[%s3933_s3 + $0x30] sm:$0xf]  ;;  %v2470_v19 = vld [vmem:[%s3933_s3 + $0x94] sm:$0xf0]  ;;  %v615_v33 = vpop.permute.xlu0 %614 }
  0xfa   :  { %1374 = vperm.xlu2 %2612, %v1216_v40   ;;  %v2458_v40 = vld [vmem:[%s3933_s3 + $0x34] sm:$0xf0] }
  0xfb   :  { %1369 = vperm.xlu1 %2611, %v1215_v50   ;;  %1364 = vperm.xlu0 %2610, %v1214_v45   ;;  %v2592_v50 = vld [vmem:[%s3937_s7 + $0x70] sm:$0xff]   ;;  %v2205_v3 = vor.u32 %v2458_v40, %v2204_v39  ;;  %v2253_v39 = vor.u32 %v2470_v19, %v2252_v58 }
  0xfc   :  { %v2457_v45 = vld [vmem:[%s3933_s3 + $0x34] sm:$0xf]  ;;  %v2573_v48 = vunpack.c.l.bf16 %v2592_v50 }
  0xfd   :  { %v2209_v62 = vor.u32 %v2457_v45, %v2206_v47 }
  0xff   :  { %940 = vmatmul.bf16.gmra.mxu1 %v2189_v49  ;;  %v2574_v49 = vunpack.c.h.bf16 %v2592_v50 }
 0x101   :  { %1029 = vmatmul.bf16.gmra.mxu2 %v2193_v54  ;;  %v2683_v63 = vpack.i.bf16 %v2574_v49, %v2573_v48  ;;  %v2593_v54 = vld [vmem:[%s3937_s7 + $0x78] sm:$0xff]   ;;  %v620_v48 = vpop.permute.xlu1 %619 }
 0x102   :  { %2624 = vperm.xlu2 %2612, %v2623_v55   ;;  %v2577_v55 = vunpack.c.l.bf16 %v2593_v54 }
 0x103   :  { %2619 = vperm.xlu1 %2611, %v2618_v4   ;;  %2614 = vperm.xlu0 %2610, %v2613_v5   ;;  %v2578_v4 = vunpack.c.h.bf16 %v2593_v54 }
 0x105   :  { %v2688_v5 = vpack.i.bf16 %v2578_v4, %v2577_v55 }
 0x109   :  { %v635_v11 = vpop.permute.xlu1 %634 }
 0x10a   :  { %2639 = vperm.xlu2 %2612, %v2638_v46   ;;  %v2222_v46 = vld [vmem:[%s3933_s3 + $0x58] sm:$0xf0] }
 0x10b   :  { %2634 = vperm.xlu1 %2611, %v2633_v7   ;;  %2629 = vperm.xlu0 %2610, %v2628_v10   ;;  %v2221_v7 = vor.u32 %v2462_v0, %v2220_v9  ;;  %v2225_v10 = vor.u32 %v2461_v44, %v2222_v46 }
 0x10f   :  { %945 = vmatmul.bf16.gmra.mxu1 %v2197_v12  ;;  %v2233_v12 = vor.u32 %v2463_v35, %v2230_v59  ;;  %v2270_v35 = vld [vmem:[%s3933_s3 + $0xb8] sm:$0xf0] }
 0x110   :  { %v2273_v14 = vor.u32 %v2473_v13, %v2270_v35  ;;  %v2481_v13 = vld [vmem:[%s3933_s3 + $0xf4] sm:$0xf]  ;;  %v2302_v35 = vld [vmem:[%s3933_s3 + $0xf8] sm:$0xf0] }
 0x111   :  { %1034 = vmatmul.bf16.gmra.mxu2 %v2201_v56  ;;  %v2467_v56 = vld [vmem:[%s3933_s3 + $0x84] sm:$0xf] }
 0x112   :  { %2654 = vperm.xlu2 %2612, %v2653_v15   ;;  %v2246_v15 = vld [vmem:[%s3933_s3 + $0x88] sm:$0xf0] }
 0x113   :  { %2649 = vperm.xlu1 %2611, %v2648_v53   ;;  %2644 = vperm.xlu0 %2610, %v2643_v20   ;;  %v2245_v53 = vor.u32 %v2468_v21, %v2244_v18  ;;  %v610_v20 = vpop.permute.xlu2 %609  ;;  %v2249_v24 = vor.u32 %v2467_v56, %v2246_v15 }
 0x11a   :  { %2669 = vperm.xlu2 %2612, %v2668_v36   ;;  %v2469_v36 = vld [vmem:[%s3933_s3 + $0x94] sm:$0xf] }
 0x11b   :  { %2664 = vperm.xlu1 %2611, %v2663_v34   ;;  %2659 = vperm.xlu0 %2610, %v2658_v42   ;;  %v2254_v34 = vld [vmem:[%s3933_s3 + $0x98] sm:$0xf0] }
 0x11c   :  { %v2257_v41 = vor.u32 %v2469_v36, %v2254_v34 }
 0x11f   :  { %950 = vmatmul.bf16.gmra.mxu1 %v2205_v3 }
 0x121   :  { %1039 = vmatmul.bf16.gmra.mxu2 %v2209_v62  ;;  %v2472_v62 = vld [vmem:[%s3933_s3 + $0xa4] sm:$0xf0] }
 0x122   :  { %2684 = vperm.xlu2 %2612, %v2683_v63   ;;  %v625_v63 = vpop.permute.xlu2 %624  ;;  %v2261_v55 = vor.u32 %v2472_v62, %v2260_v57 }
 0x123   :  { %2679 = vperm.xlu1 %2611, %v2678_v61   ;;  %2674 = vperm.xlu0 %2610, %v2673_v1   ;;  %v2471_v61 = vld [vmem:[%s3933_s3 + $0xa4] sm:$0xf]  ;;  %v2262_v1 = vld [vmem:[%s3933_s3 + $0xa8] sm:$0xf0] }
 0x124   :  { %v2265_v38 = vor.u32 %v2471_v61, %v2262_v1 }
 0x12a   :  { %v640_v18 = vpop.permute.xlu2 %639 }
 0x12b   :  { %2689 = vperm.xlu0 %2610, %v2688_v5  }
 0x12f   :  { %955 = vmatmul.bf16.gmra.mxu1 %v2213_v32 }
 0x131   :  { %1044 = vmatmul.bf16.gmra.mxu2 %v2217_v8  ;;  %v630_v8 = vpop.permute.xlu0 %629 }
 0x13f   :  { %960 = vmatmul.bf16.gmra.mxu1 %v2221_v7  ;;  %v2268_v7 = vld [vmem:[%s3933_s3 + $0xb0] sm:$0xf] }
 0x141   :  { %1049 = vmatmul.bf16.gmra.mxu2 %v2225_v10  ;;  %v2474_v10 = vld [vmem:[%s3933_s3 + $0xb4] sm:$0xf0] }
 0x14f   :  { %965 = vmatmul.bf16.gmra.mxu1 %v2229_v25  ;;  %v2269_v25 = vor.u32 %v2474_v10, %v2268_v7  ;;  %v2300_v10 = vld [vmem:[%s3933_s3 + $0xf0] sm:$0xf] }
 0x151   :  { %1054 = vmatmul.bf16.gmra.mxu2 %v2233_v12 }
 0x15f   :  { %970 = vmatmul.bf16.gmra.mxu1 %v2237_v27 }
 0x161   :  { %1059 = vmatmul.bf16.gmra.mxu2 %v2241_v51 }
 0x16c   :  { %v936_v31 = vpop.f32.mrf.mxu1 }
 0x16d   :  { %v937_v23 = vadd.f32 %v936_v31, %v610_v20  ;;  %v2276_v20 = vld [vmem:[%s3933_s3 + $0xc0] sm:$0xf]  ;;  %v2476_v31 = vld [vmem:[%s3933_s3 + $0xc4] sm:$0xf0] }
 0x16f   :  { %975 = vmatmul.bf16.gmra.mxu1 %v2245_v53 }
 0x171   :  { %1064 = vmatmul.bf16.gmra.mxu2 %v2249_v24  ;;  %v2475_v24 = vld [vmem:[%s3933_s3 + $0xc4] sm:$0xf] }
 0x174   :  { %v938_v30 = vpop.f32.mrf.mxu1  ;;  %v1025_v37 = vpop.f32.mrf.mxu2 }
 0x175   :  { %v1026_v43 = vadd.f32 %v1025_v37, %v937_v23  ;;  %v939_v42 = vadd.f32 %v938_v30, %v615_v33  ;;  %v645_v23 = vpop.permute.xlu0 %644  ;;  %v2278_v30 = vld [vmem:[%s3933_s3 + $0xc8] sm:$0xf0] }
 0x176   :  { %v2281_v36 = vor.u32 %v2475_v24, %v2278_v30 }
 0x177   :  { %v1105_v3 = vmax.f32 %v1026_v43, 0.0  ;;  %v2277_v43 = vor.u32 %v2476_v31, %v2276_v20 }
 0x17c   :  { %v941_v40 = vpop.f32.mrf.mxu1  ;;  %v1027_v50 = vpop.f32.mrf.mxu2 }
 0x17d   :  { %v1028_v26 = vadd.f32 %v1027_v50, %v939_v42  ;;  %v942_v49 = vadd.f32 %v941_v40, %v620_v48  ;;  %v650_v40 = vpop.permute.xlu1 %649  ;;  %v2478_v48 = vld [vmem:[%s3933_s3 + $0xd4] sm:$0xf0] }
 0x17f   :  { %v1106_v45 = vmax.f32 %v1028_v26, 0.0  ;;  %980 = vmatmul.bf16.gmra.mxu1 %v2253_v39 }
 0x181   :  { %1069 = vmatmul.bf16.gmra.mxu2 %v2257_v41  ;;  %v3417_v47 = vpack.c.bf16 %v1106_v45, %v1105_v3  ;;  %v2284_v45 = vld [vmem:[%s3933_s3 + $0xd0] sm:$0xf] }
 0x184   :  { %v943_v16 = vpop.f32.mrf.mxu1  ;;  %v1030_v2 = vpop.f32.mrf.mxu2 }
 0x185   :  { %v1031_v22 = vadd.f32 %v1030_v2, %v942_v49  ;;  %v944_v54 = vadd.f32 %v943_v16, %v625_v63  ;;  %v2477_v49 = vld [vmem:[%s3933_s3 + $0xd4] sm:$0xf]  ;;  %v2286_v16 = vld [vmem:[%s3933_s3 + $0xd8] sm:$0xf0]  ;;  %v2285_v2 = vor.u32 %v2478_v48, %v2284_v45  ;;  %v660_v63 = vpop.permute.xlu0 %659 }
 0x186   :  { %v2289_v62 = vor.u32 %v2477_v49, %v2286_v16 }
 0x187   :  { %v1107_v6 = vmax.f32 %v1031_v22, 0.0 }
 0x18c   :  { %v946_v4 = vpop.f32.mrf.mxu1  ;;  %v1032_v5 = vpop.f32.mrf.mxu2 }
 0x18d   :  { %v1033_v52 = vadd.f32 %v1032_v5, %v944_v54  ;;  %v947_v9 = vadd.f32 %v946_v4, %v630_v8  ;;  %v2292_v54 = vld [vmem:[%s3933_s3 + $0xe0] sm:$0xf]  ;;  %v2479_v4 = vld [vmem:[%s3933_s3 + $0xe4] sm:$0xf]  ;;  %v2294_v5 = vld [vmem:[%s3933_s3 + $0xe8] sm:$0xf0] }
 0x18e   :  { %v2297_v8 = vor.u32 %v2479_v4, %v2294_v5 }
 0x18f   :  { %v1108_v28 = vmax.f32 %v1033_v52, 0.0  ;;  %985 = vmatmul.bf16.gmra.mxu1 %v2261_v55  ;;  %v2480_v55 = vld [vmem:[%s3933_s3 + $0xe4] sm:$0xf0] }
 0x190   :  { %v2293_v52 = vor.u32 %v2480_v55, %v2292_v54 }
 0x191   :  { %1074 = vmatmul.bf16.gmra.mxu2 %v2265_v38  ;;  %v3431_v32 = vpack.c.bf16 %v1108_v28, %v1107_v6  ;;  %v675_v28 = vpop.permute.xlu0 %674 }
 0x194   :  { %v948_v0 = vpop.f32.mrf.mxu1  ;;  %v1035_v44 = vpop.f32.mrf.mxu2 }
 0x195   :  { %v1036_v46 = vadd.f32 %v1035_v44, %v947_v9  ;;  %v949_v59 = vadd.f32 %v948_v0, %v635_v11  ;;  %v655_v9 = vpop.permute.xlu2 %654  ;;  %v2482_v11 = vld [vmem:[%s3933_s3 + $0xf4] sm:$0xf0] }
 0x197   :  { %v1109_v29 = vmax.f32 %v1036_v46, 0.0  ;;  %v665_v46 = vpop.permute.xlu1 %664 }
 0x199   :  { %v690_v7 = vpop.permute.xlu0 %689 }
 0x19c   :  { %v951_v12 = vpop.f32.mrf.mxu1  ;;  %v1037_v17 = vpop.f32.mrf.mxu2 }
 0x19d   :  { %v1038_v60 = vadd.f32 %v1037_v17, %v949_v59  ;;  %v952_v21 = vadd.f32 %v951_v12, %v640_v18  ;;  %v2301_v59 = vor.u32 %v2482_v11, %v2300_v10  ;;  %v670_v17 = vpop.permute.xlu2 %669 }
 0x19f   :  { %v1110_v27 = vmax.f32 %v1038_v60, 0.0  ;;  %990 = vmatmul.bf16.gmra.mxu1 %v2269_v25  ;;  %v2305_v60 = vor.u32 %v2481_v13, %v2302_v35 }
 0x1a1   :  { %1079 = vmatmul.bf16.gmra.mxu2 %v2273_v14  ;;  %v3445_v51 = vpack.c.bf16 %v1110_v27, %v1109_v29  ;;  %v680_v14 = vpop.permute.xlu1 %679  ;;  %v3503_v29 = vpop.permute.xlu0 %759 }
 0x1a4   :  { %v953_v56 = vpop.f32.mrf.mxu1  ;;  %v1040_v15 = vpop.f32.mrf.mxu2 }
 0x1a5   :  { %v1041_v53 = vadd.f32 %v1040_v15, %v952_v21  ;;  %v954_v37 = vadd.f32 %v953_v56, %v645_v23  ;;  %v685_v21 = vpop.permute.xlu2 %684 }
 0x1a7   :  { %v1111_v34 = vmax.f32 %v1041_v53, 0.0 }
 0x1a9   :  { %v695_v56 = vpop.permute.xlu1 %694  ;;  %v3505_v53 = vpop.permute.xlu0 %754 }
 0x1ac   :  { %v956_v58 = vpop.f32.mrf.mxu1  ;;  %v1042_v19 = vpop.f32.mrf.mxu2 }
 0x1ad   :  { %v1043_v33 = vadd.f32 %v1042_v19, %v954_v37  ;;  %v957_v50 = vadd.f32 %v956_v58, %v650_v40 }
 0x1af   :  { %v1112_v42 = vmax.f32 %v1043_v33, 0.0  ;;  %995 = vmatmul.bf16.gmra.mxu1 %v2277_v43 }
 0x1b1   :  { %1084 = vmatmul.bf16.gmra.mxu2 %v2281_v36  ;;  %v3459_v39 = vpack.c.bf16 %v1112_v42, %v1111_v34  ;;  %v700_v42 = vpop.permute.xlu2 %699  ;;  %v3507_v48 = vpop.permute.xlu1 %764 }
 0x1b4   :  { %v3461_v26 = vpop.f32.mrf.mxu1  ;;  %v1045_v41 = vpop.f32.mrf.mxu2 }
 0x1b5   :  { %v3463_v3 = vadd.f32 %v1045_v41, %v957_v50  ;;  %v959_v49 = vadd.f32 %v3461_v26, %v655_v9 }
 0x1b7   :  { %v1113_v26 = vmax.f32 %v3463_v3, 0.0 }
 0x1bc   :  { %v961_v22 = vpop.f32.mrf.mxu1  ;;  %v3477_v57 = vpop.f32.mrf.mxu2 }
 0x1bd   :  { %v962_v40 = vadd.f32 %v961_v22, %v660_v63 }
 0x1bf   :  { %1000 = vmatmul.bf16.gmra.mxu1 %v2285_v2 }
 0x1c1   :  { %1089 = vmatmul.bf16.gmra.mxu2 %v2289_v62 }
 0x1c4   :  { %v963_v61 = vpop.f32.mrf.mxu1  ;;  %v1050_v1 = vpop.f32.mrf.mxu2 }
 0x1c5   :  { %v964_v19 = vadd.f32 %v963_v61, %v665_v46  ;;  %v1051_v16 = vadd.f32 %v1050_v1, %v962_v40  ;;  %v1048_v61 = vadd.f32 %v3477_v57, %v959_v49  ;;  %v3516_v57 = vpop.permute.xlu1 %739 }
 0x1c7   :  { %v1115_v22 = vmax.f32 %v1051_v16, 0.0  ;;  %v1114_v63 = vmax.f32 %v1048_v61, 0.0 }
 0x1cc   :  { %v966_v38 = vpop.f32.mrf.mxu1  ;;  %v1052_v6 = vpop.f32.mrf.mxu2 }
 0x1cd   :  { %v967_v37 = vadd.f32 %v966_v38, %v670_v17  ;;  %v1053_v50 = vadd.f32 %v1052_v6, %v964_v19  ;;  %v3511_v38 = vpop.permute.xlu0 %729  ;;  %v2316_v19 = vld [vmem:[%s3935_s5 + $0x10] sm:$0xf] }
 0x1cf   :  { %1005 = vmatmul.bf16.gmra.mxu1 %v2293_v52  ;;  %v1116_v4 = vmax.f32 %v1053_v50, 0.0 }
 0x1d1   :  { %1094 = vmatmul.bf16.gmra.mxu2 %v2297_v8  ;;  %v1174_v6 = vpack.c.bf16 %v1116_v4, %v1115_v22 }
 0x1d4   :  { %v968_v0 = vpop.f32.mrf.mxu1  ;;  %v1055_v44 = vpop.f32.mrf.mxu2 }
 0x1d5   :  { %v969_v20 = vadd.f32 %v968_v0, %v675_v28  ;;  %v1056_v33 = vadd.f32 %v1055_v44, %v967_v37  ;;  %v3513_v28 = vpop.permute.xlu2 %749  ;;  %v1173_v44 = vpack.c.bf16 %v1114_v63, %v1113_v26  ;;  %v725_v10 = vpop.permute.xlu0 %724 }
 0x1d7   :  { %v1117_v2 = vmax.f32 %v1056_v33, 0.0  ;;  %v2486_v33 = vld [vmem:[%s3935_s5 + $0x14] sm:$0xf0] }
 0x1dc   :  { %v971_v25 = vpop.f32.mrf.mxu1  ;;  %v1057_v12 = vpop.f32.mrf.mxu2 }
 0x1dd   :  { %v972_v15 = vadd.f32 %v971_v25, %v680_v14  ;;  %v1058_v43 = vadd.f32 %v1057_v12, %v969_v20  ;;  %v3521_v25 = vpop.permute.xlu2 %744  ;;  %v3524_v12 = vpop.permute.xlu1 %734  ;;  %v2308_v14 = vld [vmem:[%s3935_s5] sm:$0xf] }
 0x1de   :  { %v705_v17 = vpop.permute.xlu0 %704 }
 0x1df   :  { %1010 = vmatmul.bf16.gmra.mxu1 %v2301_v59  ;;  %v1118_v41 = vmax.f32 %v1058_v43, 0.0 }
 0x1e1   :  { %1099 = vmatmul.bf16.gmra.mxu2 %v2305_v60  ;;  %v1175_v52 = vpack.c.bf16 %v1118_v41, %v1117_v2 }
 0x1e4   :  { %v973_v27 = vpop.f32.mrf.mxu1  ;;  %v1060_v18 = vpop.f32.mrf.mxu2 }
 0x1e5   :  { %v974_v31 = vadd.f32 %v973_v27, %v685_v21  ;;  %v1061_v23 = vadd.f32 %v1060_v18, %v972_v15  ;;  %v720_v20 = vpop.permute.xlu2 %719 }
 0x1e7   :  { %v1119_v36 = vmax.f32 %v1061_v23, 0.0 }
 0x1ec   :  { %v976_v24 = vpop.f32.mrf.mxu1  ;;  %v1062_v30 = vpop.f32.mrf.mxu2 }
 0x1ed   :  { %v1063_v58 = vadd.f32 %v1062_v30, %v974_v31  ;;  %v977_v62 = vadd.f32 %v976_v24, %v690_v7  ;;  %v715_v43 = vpop.permute.xlu2 %714 }
 0x1ef   :  { %v1120_v34 = vmax.f32 %v1063_v58, 0.0 }
 0x1f1   :  { %v1176_v45 = vpack.c.bf16 %v1120_v34, %v1119_v36 }
 0x1f3   :  { %1537 = vmatpush.bf16.msrb.mxu3 %v1176_v45 }
 0x1f4   :  { %v978_v54 = vpop.f32.mrf.mxu1  ;;  %v1065_v55 = vpop.f32.mrf.mxu2 }
 0x1f5   :  { %v1066_v5 = vadd.f32 %v1065_v55, %v977_v62  ;;  %v979_v1 = vadd.f32 %v978_v54, %v695_v56  ;;  %v2324_v54 = vld [vmem:[%s3935_s5 + $0x20] sm:$0xf]  ;;  %v2488_v55 = vld [vmem:[%s3935_s5 + $0x24] sm:$0xf0] }
 0x1f7   :  { %1538 = vmatpush.bf16.msrb.mxu3 %v1175_v52  ;;  %v1121_v46 = vmax.f32 %v1066_v5, 0.0  ;;  %v2325_v52 = vor.u32 %v2488_v55, %v2324_v54 }
 0x1fb   :  { %1539 = vmatpush.bf16.msrb.mxu3 %v1174_v6 }
 0x1fc   :  { %v981_v8 = vpop.f32.mrf.mxu1  ;;  %v1067_v9 = vpop.f32.mrf.mxu2 }
 0x1fd   :  { %v1068_v0 = vadd.f32 %v1067_v9, %v979_v1  ;;  %v982_v13 = vadd.f32 %v981_v8, %v700_v42  ;;  %v2317_v42 = vor.u32 %v2486_v33, %v2316_v19 }
 0x1ff   :  { %v1122_v7 = vmax.f32 %v1068_v0, 0.0  ;;  %1540 = vmatpush.bf16.msrb.mxu3 %v1173_v44  ;;  %v2332_v0 = vld [vmem:[%s3935_s5 + $0x30] sm:$0xf]  ;;  %v2490_v44 = vld [vmem:[%s3935_s5 + $0x34] sm:$0xf0] }
 0x201   :  { %v3518_v11 = vpack.c.bf16 %v1122_v7, %v1121_v46 }
 0x203   :  { %1541 = vmatpush.bf16.msrb.mxu3 %v3459_v39  ;;  %v2484_v39 = vld [vmem:[%s3935_s5 + $0x4] sm:$0xf0] }
 0x204   :  { %v983_v35 = vpop.f32.mrf.mxu1  ;;  %v1070_v59 = vpop.f32.mrf.mxu2  ;;  %v2309_v56 = vor.u32 %v2484_v39, %v2308_v14 }
 0x205   :  { %v1071_v3 = vadd.f32 %v1070_v59, %v982_v13  ;;  %v984_v60 = vadd.f32 %v983_v35, %v705_v17  ;;  %v2492_v59 = vld [vmem:[%s3935_s5 + $0x44] sm:$0xf0] }
 0x207   :  { %1542 = vmatpush.bf16.msrb.mxu3 %v3445_v51  ;;  %v1123_v15 = vmax.f32 %v1071_v3, 0.0 }
 0x20b   :  { %1543 = vmatpush.bf16.msrb.mxu3 %v3431_v32  ;;  %v710_v32 = vpop.permute.xlu1 %709 }
 0x20c   :  { %v986_v27 = vpop.f32.mrf.mxu1  ;;  %v1072_v18 = vpop.f32.mrf.mxu2 }
 0x20d   :  { %v1073_v21 = vadd.f32 %v1072_v18, %v984_v60  ;;  %v987_v23 = vadd.f32 %v986_v27, %v710_v32  ;;  %v2348_v27 = vld [vmem:[%s3935_s5 + $0x50] sm:$0xf]  ;;  %v2494_v18 = vld [vmem:[%s3935_s5 + $0x54] sm:$0xf0] }
 0x20f   :  { %v1124_v51 = vmax.f32 %v1073_v21, 0.0  ;;  %1544 = vmatpush.bf16.msrb.mxu3 %v3417_v47 }
 0x211   :  { %v3534_v31 = vpack.c.bf16 %v1124_v51, %v1123_v15  ;;  %v2349_v15 = vor.u32 %v2494_v18, %v2348_v27 }
 0x212   :  { %1545 = vmatmul.bf16.vlgmr.msrb.gmra.mxu3 %v2309_v56 }
 0x214   :  { %v988_v24 = vpop.f32.mrf.mxu1  ;;  %v1075_v30 = vpop.f32.mrf.mxu2 }
 0x215   :  { %v1076_v37 = vadd.f32 %v1075_v30, %v987_v23  ;;  %v989_v58 = vadd.f32 %v988_v24, %v715_v43  ;;  %v2496_v43 = vld [vmem:[%s3935_s5 + $0x64] sm:$0xf0] }
 0x217   :  { %v1125_v40 = vmax.f32 %v1076_v37, 0.0  ;;  %v2356_v37 = vld [vmem:[%s3935_s5 + $0x60] sm:$0xf] }
 0x21c   :  { %v991_v47 = vpop.f32.mrf.mxu1  ;;  %v1077_v36 = vpop.f32.mrf.mxu2 }
 0x21d   :  { %v1078_v34 = vadd.f32 %v1077_v36, %v989_v58  ;;  %v992_v45 = vadd.f32 %v991_v47, %v720_v20  ;;  %v2357_v36 = vor.u32 %v2496_v43, %v2356_v37 }
 0x21f   :  { %v1126_v50 = vmax.f32 %v1078_v34, 0.0 }
 0x221   :  { %v3542_v41 = vpack.c.bf16 %v1126_v50, %v1125_v40 }
 0x222   :  { %1550 = vmatmul.bf16.gmra.mxu3 %v2317_v42 }
 0x224   :  { %v993_v49 = vpop.f32.mrf.mxu1  ;;  %v1080_v16 = vpop.f32.mrf.mxu2 }
 0x225   :  { %v1081_v2 = vadd.f32 %v1080_v16, %v992_v45  ;;  %v994_v62 = vadd.f32 %v993_v49, %v725_v10  ;;  %v2333_v10 = vor.u32 %v2490_v44, %v2332_v0  ;;  %v2485_v0 = vld [vmem:[%s3935_s5 + $0x14] sm:$0xf] }
 0x227   :  { %v1127_v22 = vmax.f32 %v1081_v2, 0.0 }
 0x22c   :  { %v996_v61 = vpop.f32.mrf.mxu1  ;;  %v1082_v4 = vpop.f32.mrf.mxu2 }
 0x22d   :  { %v1083_v5 = vadd.f32 %v1082_v4, %v994_v62  ;;  %v997_v26 = vadd.f32 %v996_v61, %v3511_v38  ;;  %v2340_v38 = vld [vmem:[%s3935_s5 + $0x40] sm:$0xf]  ;;  %v2498_v4 = vld [vmem:[%s3935_s5 + $0x74] sm:$0xf0] }
 0x22e   :  { %v2341_v60 = vor.u32 %v2492_v59, %v2340_v38  ;;  %v2487_v38 = vld [vmem:[%s3935_s5 + $0x24] sm:$0xf]  ;;  %v2326_v59 = vld [vmem:[%s3935_s5 + $0x28] sm:$0xf0] }
 0x22f   :  { %v1128_v63 = vmax.f32 %v1083_v5, 0.0 }
 0x231   :  { %v3550_v6 = vpack.c.bf16 %v1128_v63, %v1127_v22  ;;  %v2372_v22 = vld [vmem:[%s3935_s5 + $0x80] sm:$0xf]  ;;  %v2500_v63 = vld [vmem:[%s3935_s5 + $0x84] sm:$0xf0] }
 0x232   :  { %1555 = vmatmul.bf16.gmra.mxu3 %v2325_v52 }
 0x234   :  { %v998_v1 = vpop.f32.mrf.mxu1  ;;  %v1085_v8 = vpop.f32.mrf.mxu2 }
 0x235   :  { %v3553_v9 = vadd.f32 %v1085_v8, %v997_v26  ;;  %v999_v49 = vadd.f32 %v998_v1, %v3524_v12  ;;  %v2364_v12 = vld [vmem:[%s3935_s5 + $0x70] sm:$0xf]  ;;  %v2373_v26 = vor.u32 %v2500_v63, %v2372_v22 }
 0x236   :  { %v2365_v52 = vor.u32 %v2498_v4, %v2364_v12  ;;  %v2380_v8 = vld [vmem:[%s3935_s5 + $0x90] sm:$0xf]  ;;  %v2513_v12 = vld [vmem:[%s3935_s5 + $0xf4] sm:$0xf]  ;;  %v2430_v4 = vld [vmem:[%s3935_s5 + $0xf8] sm:$0xf0] }
 0x23c   :  { %v1001_v46 = vpop.f32.mrf.mxu1  ;;  %v1087_v7 = vpop.f32.mrf.mxu2 }
 0x23d   :  { %v1002_v42 = vadd.f32 %v1001_v46, %v3516_v57  ;;  %v1129_v57 = vmax.f32 %v3553_v9, 0.0  ;;  %v2502_v9 = vld [vmem:[%s3935_s5 + $0x94] sm:$0xf0] }
 0x23e   :  { %v2381_v46 = vor.u32 %v2502_v9, %v2380_v8  ;;  %v2358_v8 = vld [vmem:[%s3935_s5 + $0x68] sm:$0xf0] }
 0x242   :  { %1560 = vmatmul.bf16.gmra.mxu3 %v2333_v10 }
 0x244   :  { %v1003_v13 = vpop.f32.mrf.mxu1  ;;  %v1090_v35 = vpop.f32.mrf.mxu2 }
 0x245   :  { %v1091_v16 = vadd.f32 %v1090_v35, %v1002_v42  ;;  %v2504_v35 = vld [vmem:[%s3935_s5 + $0xa4] sm:$0xf0] }
 0x247   :  { %v1131_v55 = vmax.f32 %v1091_v16, 0.0 }
 0x24c   :  { %v1006_v3 = vpop.f32.mrf.mxu1  ;;  %v1092_v17 = vpop.f32.mrf.mxu2 }
 0x24d   :  { %v1007_v19 = vadd.f32 %v1006_v3, %v3513_v28  ;;  %v1088_v28 = vadd.f32 %v1087_v7, %v999_v49 }
 0x252   :  { %1565 = vmatmul.bf16.gmra.mxu3 %v2341_v60  ;;  %v2329_v60 = vor.u32 %v2487_v38, %v2326_v59 }
 0x254   :  { %v1008_v14 = vpop.f32.mrf.mxu1  ;;  %v1095_v39 = vpop.f32.mrf.mxu2 }
 0x255   :  { %v1009_v23 = vadd.f32 %v1008_v14, %v3505_v53  ;;  %v1096_v53 = vadd.f32 %v1095_v39, %v1007_v19  ;;  %v3645_v14 = vpop.permute.xlu1 %1219  ;;  %v3647_v39 = vpop.permute.xlu0 %1229  ;;  %v2404_v19 = vld [vmem:[%s3935_s5 + $0xc0] sm:$0xf] }
 0x257   :  { %v1133_v2 = vmax.f32 %v1096_v53, 0.0 }
 0x25c   :  { %v1097_v21 = vpop.f32.mrf.mxu2  ;;  %v1011_v56 = vpop.f32.mrf.mxu1 }
 0x25d   :  { %v1012_v32 = vadd.f32 %v1011_v56, %v3503_v29  ;;  %v1098_v33 = vadd.f32 %v1097_v21, %v1009_v23  ;;  %v1004_v29 = vadd.f32 %v1003_v13, %v3521_v25  ;;  %v1130_v25 = vmax.f32 %v1088_v28, 0.0  ;;  %v2388_v13 = vld [vmem:[%s3935_s5 + $0xa0] sm:$0xf]  ;;  %v3651_v18 = vpop.permute.xlu1 %1234  ;;  %v2396_v21 = vld [vmem:[%s3935_s5 + $0xb0] sm:$0xf]  ;;  %v3656_v56 = vpop.permute.xlu0 %1244 }
 0x25e   :  { %v2510_v28 = vld [vmem:[%s3935_s5 + $0xd4] sm:$0xf0] }
 0x25f   :  { %v1093_v40 = vadd.f32 %v1092_v17, %v1004_v29  ;;  %v1134_v50 = vmax.f32 %v1098_v33, 0.0  ;;  %v1181_v5 = vpack.c.bf16 %v1130_v25, %v1129_v57  ;;  %v2389_v17 = vor.u32 %v2504_v35, %v2388_v13  ;;  %v2342_v29 = vld [vmem:[%s3935_s5 + $0x48] sm:$0xf0] }
 0x261   :  { %v1132_v62 = vmax.f32 %v1093_v40, 0.0  ;;  %v1183_v54 = vpack.c.bf16 %v1134_v50, %v1133_v2  ;;  %v2412_v2 = vld [vmem:[%s3935_s5 + $0xd0] sm:$0xf] }
 0x262   :  { %1570 = vmatmul.bf16.gmra.mxu3 %v2349_v15  ;;  %v2506_v15 = vld [vmem:[%s3935_s5 + $0xb4] sm:$0xf0]  ;;  %v2413_v25 = vor.u32 %v2510_v28, %v2412_v2 }
 0x263   :  { %v1182_v61 = vpack.c.bf16 %v1132_v62, %v1131_v55  ;;  %v2397_v23 = vor.u32 %v2506_v15, %v2396_v21  ;;  %v2493_v62 = vld [vmem:[%s3935_s5 + $0x54] sm:$0xf]  ;;  %v2366_v15 = vld [vmem:[%s3935_s5 + $0x78] sm:$0xf0] }
 0x264   :  { %v1100_v51 = vpop.f32.mrf.mxu2  ;;  %v1013_v20 = vpop.f32.mrf.mxu1  ;;  %v2497_v21 = vld [vmem:[%s3935_s5 + $0x74] sm:$0xf] }
 0x265   :  { %v1014_v24 = vadd.f32 %v1013_v20, %v3507_v48  ;;  %v1101_v30 = vadd.f32 %v1100_v51, %v1012_v32  ;;  %v2489_v51 = vld [vmem:[%s3935_s5 + $0x34] sm:$0xf]  ;;  %v2334_v20 = vld [vmem:[%s3935_s5 + $0x38] sm:$0xf0]  ;;  %v3671_v37 = vpop.permute.xlu1 %1249  ;;  %v3673_v43 = vpop.permute.xlu0 %1259 }
 0x267   :  { %v1135_v34 = vmax.f32 %v1101_v30, 0.0  ;;  %v3669_v30 = vpop.permute.xlu2 %1224 }
 0x26c   :  { %v1102_v58 = vpop.f32.mrf.mxu2 }
 0x26d   :  { %v1103_v47 = vadd.f32 %v1102_v58, %v1014_v24  ;;  %v2337_v24 = vor.u32 %v2489_v51, %v2334_v20  ;;  %v3695_v40 = vpop.permute.xlu0 %1274 }
 0x26f   :  { %v1136_v48 = vmax.f32 %v1103_v47, 0.0  ;;  %v3680_v33 = vpop.permute.xlu2 %1239  ;;  %v2508_v47 = vld [vmem:[%s3935_s5 + $0xc4] sm:$0xf0] }
 0x271   :  { %v1184_v45 = vpack.c.bf16 %v1136_v48, %v1135_v34  ;;  %v3693_v34 = vpop.permute.xlu1 %1264  ;;  %v2405_v48 = vor.u32 %v2508_v47, %v2404_v19  ;;  %v2369_v19 = vor.u32 %v2497_v21, %v2366_v15 }
 0x272   :  { %1575 = vmatmul.bf16.gmra.mxu3 %v2357_v36  ;;  %v2491_v36 = vld [vmem:[%s3935_s5 + $0x44] sm:$0xf] }
 0x273   :  { %1626 = vmatpush.bf16.msrb.mxu0 %v1184_v45  ;;  %2600 = vmatpush.bf16.msra.mxu2 %v1184_v45  ;;  %v2345_v42 = vor.u32 %v2491_v36, %v2342_v29 }
 0x275   :  { %v1290_v16 = vpop.permute.xlu0 %1289 }
 0x277   :  { %1627 = vmatpush.bf16.msrb.mxu0 %v1183_v54  ;;  %2601 = vmatpush.bf16.msra.mxu2 %v1183_v54  ;;  %v3697_v50 = vpop.permute.xlu2 %1254  ;;  %v2350_v54 = vld [vmem:[%s3935_s5 + $0x58] sm:$0xf0] }
 0x279   :  { %v3701_v49 = vpop.permute.xlu1 %1279 }
 0x27b   :  { %1628 = vmatpush.bf16.msrb.mxu0 %v1182_v61  ;;  %2602 = vmatpush.bf16.msra.mxu2 %v1182_v61  ;;  %v2353_v61 = vor.u32 %v2493_v62, %v2350_v54  ;;  %v2499_v62 = vld [vmem:[%s3935_s5 + $0x84] sm:$0xf]  ;;  %v2374_v54 = vld [vmem:[%s3935_s5 + $0x88] sm:$0xf0] }
 0x27d   :  { %v3725_v22 = vpop.permute.xlu0 %1304 }
 0x27f   :  { %1629 = vmatpush.bf16.msrb.mxu0 %v1181_v5  ;;  %2603 = vmatpush.bf16.msra.mxu2 %v1181_v5  ;;  %v3717_v57 = vpop.permute.xlu2 %1269 }
 0x281   :  { %v1295_v5 = vpop.permute.xlu1 %1294 }
 0x282   :  { %1580 = vmatmul.bf16.gmra.mxu3 %v2365_v52  ;;  %v2433_v52 = vor.u32 %v2513_v12, %v2430_v4  ;;  %v2377_v12 = vor.u32 %v2499_v62, %v2374_v54 }
 0x283   :  { %1630 = vmatpush.bf16.msrb.mxu0 %v3550_v6  ;;  %2604 = vmatpush.bf16.msra.mxu2 %v3550_v6  ;;  %v2483_v6 = vld [vmem:[%s3935_s5 + $0x4] sm:$0xf] }
 0x287   :  { %1631 = vmatpush.bf16.msrb.mxu0 %v3542_v41  ;;  %2605 = vmatpush.bf16.msra.mxu2 %v3542_v41  ;;  %v2310_v41 = vld [vmem:[%s3935_s5 + $0x8] sm:$0xf0] }
 0x288   :  { %v2313_v1 = vor.u32 %v2483_v6, %v2310_v41  ;;  %v1285_v6 = vpop.permute.xlu2 %1284  ;;  %v2420_v41 = vld [vmem:[%s3935_s5 + $0xe0] sm:$0xf] }
 0x289   :  { %v3741_v9 = vpop.permute.xlu1 %1309 }
 0x28b   :  { %1632 = vmatpush.bf16.msrb.mxu0 %v3534_v31  ;;  %2606 = vmatpush.bf16.msra.mxu2 %v3534_v31 }
 0x28f   :  { %1633 = vmatpush.bf16.msrb.mxu0 %v3518_v11  ;;  %2607 = vmatpush.bf16.msra.mxu2 %v3518_v11  ;;  %v2318_v11 = vld [vmem:[%s3935_s5 + $0x18] sm:$0xf0] }
 0x290   :  { %v2321_v7 = vor.u32 %v2485_v0, %v2318_v11  ;;  %v3743_v0 = vpop.permute.xlu0 %1319  ;;  %v1300_v13 = vpop.permute.xlu2 %1299 }
 0x291   :  { %v3749_v38 = vpop.permute.xlu1 %1324 }
 0x292   :  { %1585 = vmatmul.bf16.gmra.mxu3 %v2373_v26  ;;  %1634 = vmatmul.bf16.vlgmr.msrb.gmra.mxu0 %v2313_v1  ;;  %v2512_v26 = vld [vmem:[%s3935_s5 + $0xe4] sm:$0xf0]  ;;  %v2495_v1 = vld [vmem:[%s3935_s5 + $0x64] sm:$0xf] }
 0x293   :  { %1709 = vmatmul.bf16.vlgmr.msra.gmra.mxu2 %v2433_v52 }
 0x295   :  { %v3613_v31 = vpop.f32.mrf.mxu3 }
 0x298   :  { %v3751_v59 = vpop.permute.xlu0 %1334  ;;  %v3765_v51 = vpop.permute.xlu2 %1314 }
 0x299   :  { %v3769_v47 = vpop.permute.xlu1 %1339 }
 0x29d   :  { %v3627_v44 = vpop.f32.mrf.mxu3 }
 0x2a0   :  { %v3771_v36 = vpop.permute.xlu0 %1349 }
 0x2a1   :  { %v3777_v2 = vpop.permute.xlu1 %1354 }
 0x2a2   :  { %1590 = vmatmul.bf16.gmra.mxu3 %v2381_v46  ;;  %1639 = vmatmul.bf16.gmra.mxu0 %v2321_v7  ;;  %v2421_v46 = vor.u32 %v2512_v26, %v2420_v41  ;;  %v2361_v7 = vor.u32 %v2495_v1, %v2358_v8  ;;  %v1549_v8 = vadd.f32 %v3627_v44, %v3669_v30  ;;  %v2382_v44 = vld [vmem:[%s3935_s5 + $0x98] sm:$0xf0] }
 0x2a5   :  { %v3629_v10 = vpop.f32.mrf.mxu3 }
 0x2a8   :  { %v3779_v28 = vpop.permute.xlu0 %1364 }
 0x2a9   :  { %v3793_v41 = vpop.permute.xlu1 %1369 }
 0x2ad   :  { %v3643_v3 = vpop.f32.mrf.mxu3 }
 0x2b0   :  { %v2615_v26 = vpop.permute.xlu0 %2614 }
 0x2b2   :  { %1595 = vmatmul.bf16.gmra.mxu3 %v2389_v17  ;;  %1644 = vmatmul.bf16.gmra.mxu0 %v2329_v60  ;;  %v2428_v17 = vld [vmem:[%s3935_s5 + $0xf0] sm:$0xf]  ;;  %v2514_v60 = vld [vmem:[%s3935_s5 + $0xf4] sm:$0xf0] }
 0x2b5   :  { %v3649_v27 = vpop.f32.mrf.mxu3 }
 0x2bd   :  { %v3667_v32 = vpop.f32.mrf.mxu3 }
 0x2c2   :  { %1600 = vmatmul.bf16.gmra.mxu3 %v2397_v23  ;;  %1649 = vmatmul.bf16.gmra.mxu0 %v2337_v24  ;;  %v2429_v24 = vor.u32 %v2514_v60, %v2428_v17 }
 0x2c5   :  { %v3675_v58 = vpop.f32.mrf.mxu3 }
 0x2cd   :  { %v3691_v53 = vpop.f32.mrf.mxu3 }
 0x2d2   :  { %1605 = vmatmul.bf16.gmra.mxu3 %v2405_v48  ;;  %1654 = vmatmul.bf16.gmra.mxu0 %v2345_v42  ;;  %v3775_v42 = vpop.permute.xlu2 %1329 }
 0x2d5   :  { %v3699_v45 = vpop.f32.mrf.mxu3 }
 0x2dd   :  { %v3715_v55 = vpop.f32.mrf.mxu3 }
 0x2e2   :  { %1610 = vmatmul.bf16.gmra.mxu3 %v2413_v25  ;;  %1659 = vmatmul.bf16.gmra.mxu0 %v2353_v61  ;;  %v1547_v61 = vadd.f32 %v3613_v31, %v3645_v14  ;;  %v2616_v31 = vunpack.i.l.bf16 %v2615_v26 }
 0x2e5   :  { %v3727_v63 = vpop.f32.mrf.mxu3 }
 0x2ed   :  { %v3745_v11 = vpop.f32.mrf.mxu3 }
 0x2f2   :  { %1615 = vmatmul.bf16.gmra.mxu3 %v2421_v46  ;;  %1664 = vmatmul.bf16.gmra.mxu0 %v2361_v7 }
 0x2f5   :  { %v3747_v35 = vpop.f32.mrf.mxu3 }
 0x2fd   :  { %v1578_v20 = vpop.f32.mrf.mxu3 }
 0x2fe   :  { %v3767_v23 = vadd.f32 %v1578_v20, %v1285_v6  ;;  %v3791_v6 = vpop.permute.xlu2 %1344  ;;  %v2501_v20 = vld [vmem:[%s3935_s5 + $0x94] sm:$0xf] }
 0x2ff   :  { %v2385_v54 = vor.u32 %v2501_v20, %v2382_v44  ;;  %v2390_v20 = vld [vmem:[%s3935_s5 + $0xa8] sm:$0xf0] }
 0x302   :  { %1620 = vmatmul.bf16.gmra.mxu3 %v2429_v24  ;;  %1669 = vmatmul.bf16.gmra.mxu0 %v2369_v19 }
 0x305   :  { %v1581_v29 = vpop.f32.mrf.mxu3 }
 0x306   :  { %v3773_v48 = vadd.f32 %v1581_v29, %v1290_v16  ;;  %v3799_v15 = vpop.permute.xlu2 %1359 }
 0x30d   :  { %v1583_v25 = vpop.f32.mrf.mxu3 }
 0x30e   :  { %v3789_v16 = vadd.f32 %v1583_v25, %v1295_v5  ;;  %v2617_v5 = vunpack.i.h.bf16 %v2615_v26  ;;  %v2620_v25 = vpop.permute.xlu1 %2619 }
 0x30f   :  { %v1635_v4 = vpop.f32.mrf.mxu0 }
 0x310   :  { %v1636_v52 = vadd.f32 %v1635_v4, %v1547_v61 }
 0x312   :  { %1674 = vmatmul.bf16.gmra.mxu0 %v2377_v12  ;;  %v1715_v46 = vmax.f32 %v1636_v52, 0.0  ;;  %v2621_v52 = vunpack.i.l.bf16 %v2620_v25 }
 0x314   :  { %v1971_v60 = vmul.f32 %v2616_v31, %v1715_v46 }
 0x315   :  { %v1586_v1 = vpop.f32.mrf.mxu3 }
 0x316   :  { %v3797_v7 = vadd.f32 %v1586_v1, %v1300_v13  ;;  %v1552_v13 = vadd.f32 %v3629_v10, %v3647_v39  ;;  %v2004_v19 = vsel %vm2003_vm2, %v1971_v60, 0.0  ;;  %v1554_v39 = vadd.f32 %v3643_v3, %v3651_v18 }
 0x317   :  { %v1637_v17 = vpop.f32.mrf.mxu0  ;;  %v1557_v18 = vadd.f32 %v3649_v27, %v3680_v33 }
 0x318   :  { %v1638_v14 = vadd.f32 %v1637_v17, %v1549_v8  ;;  %v3814_v8 = vpop.permute.xlu2 %1374 }
 0x31a   :  { %v1716_v21 = vmax.f32 %v1638_v14, 0.0 }
 0x31c   :  { %v1972_v30 = vmul.f32 %v2617_v5, %v1716_v21  ;;  %v2622_v5 = vunpack.i.h.bf16 %v2620_v25  ;;  %v2503_v21 = vld [vmem:[%s3935_s5 + $0xa4] sm:$0xf] }
 0x31d   :  { %v1588_v24 = vpop.f32.mrf.mxu3 }
 0x31e   :  { %v2005_v29 = vsel %vm2003_vm2, %v1972_v30, 0.0  ;;  %v3812_v62 = vadd.f32 %v1588_v24, %v3725_v22 }
 0x31f   :  { %v2006_v61 = vadd.f32 %v2005_v29, %v2004_v19  ;;  %v1640_v12 = vpop.f32.mrf.mxu0 }
 0x320   :  { %v1641_v4 = vadd.f32 %v1640_v12, %v1552_v13  ;;  %v2393_v13 = vor.u32 %v2503_v21, %v2390_v20  ;;  %v2625_v24 = vpop.permute.xlu2 %2624 }
 0x321   :  { %v2626_v25 = vunpack.i.l.bf16 %v2625_v24 }
 0x322   :  { %v1717_v26 = vmax.f32 %v1641_v4, 0.0  ;;  %1679 = vmatmul.bf16.gmra.mxu0 %v2385_v54 }
 0x324   :  { %v1973_v1 = vmul.f32 %v2621_v52, %v1717_v26  ;;  %v1559_v52 = vadd.f32 %v3667_v32, %v3656_v56  ;;  %v1562_v56 = vadd.f32 %v3675_v58, %v3671_v37 }
 0x325   :  { %v1591_v10 = vpop.f32.mrf.mxu3 }
 0x326   :  { %v2007_v46 = vsel %vm2003_vm2, %v1973_v1, 0.0  ;;  %v3820_v22 = vadd.f32 %v1591_v10, %v3741_v9  ;;  %v2627_v10 = vunpack.i.h.bf16 %v2625_v24 }
 0x327   :  { %v2008_v17 = vadd.f32 %v2007_v46, %v2006_v61  ;;  %v1642_v31 = vpop.f32.mrf.mxu0  ;;  %v2505_v46 = vld [vmem:[%s3935_s5 + $0xb4] sm:$0xf] }
 0x328   :  { %v1643_v14 = vadd.f32 %v1642_v31, %v1554_v39 }
 0x32a   :  { %v1718_v60 = vmax.f32 %v1643_v14, 0.0  ;;  %v2630_v14 = vpop.permute.xlu0 %2629 }
 0x32b   :  { %v2631_v20 = vunpack.i.l.bf16 %v2630_v14  ;;  %v2632_v37 = vunpack.i.h.bf16 %v2630_v14  ;;  %v1572_v14 = vadd.f32 %v3727_v63, %v3717_v57 }
 0x32c   :  { %v1974_v44 = vmul.f32 %v2622_v5, %v1718_v60 }
 0x32d   :  { %v1593_v3 = vpop.f32.mrf.mxu3 }
 0x32e   :  { %v2009_v9 = vsel %vm2003_vm2, %v1974_v44, 0.0  ;;  %v3832_v30 = vadd.f32 %v1593_v3, %v3765_v51 }
 0x32f   :  { %v2010_v19 = vadd.f32 %v2009_v9, %v2008_v17  ;;  %v1645_v29 = vpop.f32.mrf.mxu0  ;;  %v2398_v17 = vld [vmem:[%s3935_s5 + $0xb8] sm:$0xf0] }
 0x330   :  { %v1646_v54 = vadd.f32 %v1645_v29, %v1557_v18  ;;  %v1564_v18 = vadd.f32 %v3691_v53, %v3697_v50  ;;  %v2507_v29 = vld [vmem:[%s3935_s5 + $0xc4] sm:$0xf] }
 0x332   :  { %v1719_v61 = vmax.f32 %v1646_v54, 0.0  ;;  %1684 = vmatmul.bf16.gmra.mxu0 %v2393_v13  ;;  %v2406_v54 = vld [vmem:[%s3935_s5 + $0xc8] sm:$0xf0] }
 0x333   :  { %v2409_v50 = vor.u32 %v2507_v29, %v2406_v54  ;;  %v2422_v29 = vld [vmem:[%s3935_s5 + $0xe8] sm:$0xf0] }
 0x334   :  { %v1975_v12 = vmul.f32 %v2626_v25, %v1719_v61  ;;  %v1567_v61 = vadd.f32 %v3699_v45, %v3673_v43 }
 0x335   :  { %v1596_v4 = vpop.f32.mrf.mxu3 }
 0x336   :  { %v2011_v27 = vsel %vm2003_vm2, %v1975_v12, 0.0  ;;  %v3838_v33 = vadd.f32 %v1596_v4, %v3743_v0  ;;  %v2401_v0 = vor.u32 %v2505_v46, %v2398_v17  ;;  %v2635_v12 = vpop.permute.xlu1 %2634 }
 0x337   :  { %v2012_v51 = vadd.f32 %v2011_v27, %v2010_v19  ;;  %v1647_v26 = vpop.f32.mrf.mxu0  ;;  %v2637_v43 = vunpack.i.h.bf16 %v2635_v12 }
 0x338   :  { %v1648_v1 = vadd.f32 %v1647_v26, %v1559_v52 }
 0x33a   :  { %v1720_v39 = vmax.f32 %v1648_v1, 0.0 }
 0x33c   :  { %v1976_v31 = vmul.f32 %v2627_v10, %v1720_v39  ;;  %v1569_v10 = vadd.f32 %v3715_v55, %v3693_v34 }
 0x33e   :  { %v2013_v32 = vsel %vm2003_vm2, %v1976_v31, 0.0 }
 0x33f   :  { %v2014_v5 = vadd.f32 %v2013_v32, %v2012_v51  ;;  %v1650_v60 = vpop.f32.mrf.mxu0  ;;  %v2636_v51 = vunpack.i.l.bf16 %v2635_v12  ;;  %v2414_v32 = vld [vmem:[%s3935_s5 + $0xd8] sm:$0xf0] }
 0x340   :  { %v1651_v21 = vadd.f32 %v1650_v60, %v1562_v56  ;;  %v2509_v56 = vld [vmem:[%s3935_s5 + $0xd4] sm:$0xf] }
 0x341   :  { %v2417_v55 = vor.u32 %v2509_v56, %v2414_v32 }
 0x342   :  { %v1721_v44 = vmax.f32 %v1651_v21, 0.0  ;;  %1689 = vmatmul.bf16.gmra.mxu0 %v2401_v0 }
 0x344   :  { %v1977_v3 = vmul.f32 %v2631_v20, %v1721_v44 }
 0x346   :  { %v2015_v9 = vsel %vm2003_vm2, %v1977_v3, 0.0 }
 0x347   :  { %v2016_v13 = vadd.f32 %v2015_v9, %v2014_v5  ;;  %v1652_v24 = vpop.f32.mrf.mxu0  ;;  %v2640_v5 = vpop.permute.xlu2 %2639  ;;  %v1574_v9 = vadd.f32 %v3745_v11, %v3695_v40 }
 0x348   :  { %v1653_v19 = vadd.f32 %v1652_v24, %v1564_v18  ;;  %v2641_v44 = vunpack.i.l.bf16 %v2640_v5  ;;  %v2642_v57 = vunpack.i.h.bf16 %v2640_v5 }
 0x34a   :  { %v1722_v58 = vmax.f32 %v1653_v19, 0.0 }
 0x34c   :  { %v1978_v25 = vmul.f32 %v2632_v37, %v1722_v58  ;;  %v2511_v58 = vld [vmem:[%s3935_s5 + $0xe4] sm:$0xf] }
 0x34d   :  { %v2425_v11 = vor.u32 %v2511_v58, %v2422_v29 }
 0x34e   :  { %v2017_v53 = vsel %vm2003_vm2, %v1978_v25, 0.0  ;;  %v1577_v25 = vadd.f32 %v3747_v35, %v3701_v49 }
 0x34f   :  { %v2018_v4 = vadd.f32 %v2017_v53, %v2016_v13  ;;  %v1655_v52 = vpop.f32.mrf.mxu0 }
 0x350   :  { %v1656_v27 = vadd.f32 %v1655_v52, %v1567_v61  ;;  %v2645_v61 = vpop.permute.xlu0 %2644 }
 0x352   :  { %v1723_v26 = vmax.f32 %v1656_v27, 0.0  ;;  %1694 = vmatmul.bf16.gmra.mxu0 %v2409_v50 }
 0x354   :  { %v1979_v1 = vmul.f32 %v2636_v51, %v1723_v26 }
 0x356   :  { %v2019_v39 = vsel %vm2003_vm2, %v1979_v1, 0.0 }
 0x357   :  { %v2020_v46 = vadd.f32 %v2019_v39, %v2018_v4  ;;  %v1657_v17 = vpop.f32.mrf.mxu0  ;;  %v2646_v4 = vunpack.i.l.bf16 %v2645_v61  ;;  %v2647_v39 = vunpack.i.h.bf16 %v2645_v61 }
 0x358   :  { %v1658_v31 = vadd.f32 %v1657_v17, %v1569_v10  ;;  %v2650_v17 = vpop.permute.xlu1 %2649 }
 0x359   :  { %v2651_v56 = vunpack.i.l.bf16 %v2650_v17 }
 0x35a   :  { %v1724_v45 = vmax.f32 %v1658_v31, 0.0 }
 0x35c   :  { %v1980_v0 = vmul.f32 %v2637_v43, %v1724_v45 }
 0x35e   :  { %v2021_v34 = vsel %vm2003_vm2, %v1980_v0, 0.0 }
 0x35f   :  { %v2022_v60 = vadd.f32 %v2021_v34, %v2020_v46  ;;  %v1660_v21 = vpop.f32.mrf.mxu0 }
 0x360   :  { %v1661_v20 = vadd.f32 %v1660_v21, %v1572_v14  ;;  %v1598_v21 = vpop.f32.mrf.mxu3 }
 0x362   :  { %v1725_v3 = vmax.f32 %v1661_v20, 0.0  ;;  %1699 = vmatmul.bf16.gmra.mxu0 %v2417_v55 }
 0x364   :  { %v1981_v18 = vmul.f32 %v2641_v44, %v1725_v3  ;;  %v2655_v3 = vpop.permute.xlu2 %2654 }
 0x365   :  { %v2657_v29 = vunpack.i.h.bf16 %v2655_v3 }
 0x366   :  { %v2023_v13 = vsel %vm2003_vm2, %v1981_v18, 0.0 }
 0x367   :  { %v2024_v24 = vadd.f32 %v2023_v13, %v2022_v60  ;;  %v1662_v19 = vpop.f32.mrf.mxu0  ;;  %v2656_v13 = vunpack.i.l.bf16 %v2655_v3 }
 0x368   :  { %v1663_v37 = vadd.f32 %v1662_v19, %v1574_v9 }
 0x36a   :  { %v1726_v63 = vmax.f32 %v1663_v37, 0.0  ;;  %v1601_v37 = vpop.f32.mrf.mxu3 }
 0x36c   :  { %v1982_v54 = vmul.f32 %v2642_v57, %v1726_v63 }
 0x36e   :  { %v2025_v40 = vsel %vm2003_vm2, %v1982_v54, 0.0 }
 0x36f   :  { %v2026_v53 = vadd.f32 %v2025_v40, %v2024_v24  ;;  %v1665_v50 = vpop.f32.mrf.mxu0  ;;  %v2660_v40 = vpop.permute.xlu0 %2659 }
 0x370   :  { %v1666_v12 = vadd.f32 %v1665_v50, %v1577_v25 }
 0x372   :  { %v1727_v52 = vmax.f32 %v1666_v12, 0.0  ;;  %1704 = vmatmul.bf16.gmra.mxu0 %v2425_v11  ;;  %v1603_v61 = vpop.f32.mrf.mxu3  ;;  %v2661_v12 = vunpack.i.l.bf16 %v2660_v40 }
 0x374   :  { %v1983_v27 = vmul.f32 %v2646_v4, %v1727_v52 }
 0x376   :  { %v2027_v51 = vsel %vm2003_vm2, %v1983_v27, 0.0 }
 0x377   :  { %v2028_v26 = vadd.f32 %v2027_v51, %v2026_v53  ;;  %v1667_v1 = vpop.f32.mrf.mxu0 }
 0x378   :  { %v1668_v10 = vadd.f32 %v1667_v1, %v3767_v23  ;;  %v2652_v23 = vunpack.i.h.bf16 %v2650_v17 }
 0x37a   :  { %v1728_v46 = vmax.f32 %v1668_v10, 0.0  ;;  %v1606_v1 = vpop.f32.mrf.mxu3  ;;  %v2662_v10 = vunpack.i.h.bf16 %v2660_v40  ;;  %v2675_v40 = vpop.permute.xlu0 %2674 }
 0x37c   :  { %v1984_v49 = vmul.f32 %v2647_v39, %v1728_v46 }
 0x37e   :  { %v2029_v35 = vsel %vm2003_vm2, %v1984_v49, 0.0 }
 0x37f   :  { %v2030_v31 = vadd.f32 %v2029_v35, %v2028_v26  ;;  %v1670_v43 = vpop.f32.mrf.mxu0  ;;  %v2665_v35 = vpop.permute.xlu1 %2664 }
 0x380   :  { %v1671_v45 = vadd.f32 %v1670_v43, %v3773_v48  ;;  %v2666_v43 = vunpack.i.l.bf16 %v2665_v35 }
 0x382   :  { %v1729_v32 = vmax.f32 %v1671_v45, 0.0 }
 0x384   :  { %v1985_v0 = vmul.f32 %v2651_v56, %v1729_v32  ;;  %v1608_v56 = vpop.f32.mrf.mxu3 }
 0x386   :  { %v2031_v14 = vsel %vm2003_vm2, %v1985_v0, 0.0  ;;  %v1599_v0 = vadd.f32 %v1598_v21, %v3749_v38  ;;  %v1604_v21 = vadd.f32 %v1603_v61, %v3751_v59 }
 0x387   :  { %v2032_v34 = vadd.f32 %v2031_v14, %v2030_v31  ;;  %v1672_v55 = vpop.f32.mrf.mxu0 }
 0x388   :  { %v1673_v5 = vadd.f32 %v1672_v55, %v3789_v16 }
 0x38a   :  { %v1730_v60 = vmax.f32 %v1673_v5, 0.0  ;;  %v2667_v5 = vunpack.i.h.bf16 %v2665_v35 }
 0x38c   :  { %v1986_v20 = vmul.f32 %v2652_v23, %v1730_v60 }
 0x38e   :  { %v2033_v44 = vsel %vm2003_vm2, %v1986_v20, 0.0  ;;  %v1611_v20 = vpop.f32.mrf.mxu3 }
 0x38f   :  { %v2034_v18 = vadd.f32 %v2033_v44, %v2032_v34  ;;  %v1675_v9 = vpop.f32.mrf.mxu0  ;;  %v1602_v44 = vadd.f32 %v1601_v37, %v3775_v42  ;;  %v1607_v37 = vadd.f32 %v1606_v1, %v3769_v47  ;;  %v1612_v1 = vadd.f32 %v1611_v20, %v3771_v36 }
 0x390   :  { %v1676_v48 = vadd.f32 %v1675_v9, %v3797_v7 }
 0x392   :  { %v1731_v24 = vmax.f32 %v1676_v48, 0.0 }
 0x394   :  { %v1987_v19 = vmul.f32 %v2656_v13, %v1731_v24 }
 0x396   :  { %v2035_v57 = vsel %vm2003_vm2, %v1987_v19, 0.0 }
 0x397   :  { %v2036_v63 = vadd.f32 %v2035_v57, %v2034_v18  ;;  %v1677_v58 = vpop.f32.mrf.mxu0  ;;  %v1613_v57 = vpop.f32.mrf.mxu3 }
 0x398   :  { %v1678_v16 = vadd.f32 %v1677_v58, %v3812_v62 }
 0x39a   :  { %v1732_v54 = vmax.f32 %v1678_v16, 0.0 }
 0x39c   :  { %v1988_v25 = vmul.f32 %v2657_v29, %v1732_v54 }
 0x39e   :  { %v2037_v11 = vsel %vm2003_vm2, %v1988_v25, 0.0 }
 0x39f   :  { %v2038_v53 = vadd.f32 %v2037_v11, %v2036_v63  ;;  %v1680_v50 = vpop.f32.mrf.mxu0 }
 0x3a0   :  { %v1681_v7 = vadd.f32 %v1680_v50, %v3820_v22 }
 0x3a2   :  { %v1733_v4 = vmax.f32 %v1681_v7, 0.0  ;;  %v1616_v7 = vpop.f32.mrf.mxu3 }
 0x3a4   :  { %v1989_v52 = vmul.f32 %v2661_v12, %v1733_v4  ;;  %v2676_v12 = vunpack.i.l.bf16 %v2675_v40 }
 0x3a6   :  { %v2039_v27 = vsel %vm2003_vm2, %v1989_v52, 0.0 }
 0x3a7   :  { %v2040_v51 = vadd.f32 %v2039_v27, %v2038_v53  ;;  %v1682_v26 = vpop.f32.mrf.mxu0 }
 0x3a8   :  { %v1683_v62 = vadd.f32 %v1682_v26, %v3832_v30 }
 0x3aa   :  { %v1734_v39 = vmax.f32 %v1683_v62, 0.0 }
 0x3ac   :  { %v1990_v46 = vmul.f32 %v2662_v10, %v1734_v39  ;;  %v1609_v10 = vadd.f32 %v1608_v56, %v3791_v6 }
 0x3ae   :  { %v2041_v49 = vsel %vm2003_vm2, %v1990_v46, 0.0  ;;  %v1710_v46 = vpop.f32.mrf.mxu2 }
 0x3af   :  { %v2042_v17 = vadd.f32 %v2041_v49, %v2040_v51  ;;  %v1685_v31 = vpop.f32.mrf.mxu0  ;;  %v1618_v51 = vpop.f32.mrf.mxu3  ;;  %v1614_v49 = vadd.f32 %v1613_v57, %v3777_v2 }
 0x3b0   :  { %v1686_v22 = vadd.f32 %v1685_v31, %v3838_v33  ;;  %v2670_v33 = vpop.permute.xlu2 %2669 }
 0x3b1   :  { %v2671_v13 = vunpack.i.l.bf16 %v2670_v33  ;;  %v2672_v29 = vunpack.i.h.bf16 %v2670_v33 }
 0x3b2   :  { %v1735_v45 = vmax.f32 %v1686_v22, 0.0 }
 0x3b4   :  { %v1991_v32 = vmul.f32 %v2666_v43, %v1735_v45  ;;  %v2677_v43 = vunpack.i.h.bf16 %v2675_v40  ;;  %v1617_v45 = vadd.f32 %v1616_v7, %v3799_v15 }
 0x3b6   :  { %v2043_v14 = vsel %vm2003_vm2, %v1991_v32, 0.0  ;;  %v1712_v20 = vpop.f32.mrf.mxu2 }
 0x3b7   :  { %v2044_v30 = vadd.f32 %v2043_v14, %v2042_v17  ;;  %v1687_v34 = vpop.f32.mrf.mxu0  ;;  %v1621_v62 = vpop.f32.mrf.mxu3 }
 0x3b8   :  { %v1688_v55 = vadd.f32 %v1687_v34, %v1599_v0  ;;  %v2680_v17 = vpop.permute.xlu1 %2679  ;;  %v1622_v6 = vadd.f32 %v1621_v62, %v3793_v41  ;;  %v2074_v62 = vstv %s3938_s8 }
 0x3b9   :  { %v2681_v0 = vunpack.i.l.bf16 %v2680_v17 }
 0x3ba   :  { %v1736_v23 = vmax.f32 %v1688_v55, 0.0  ;;  %v2685_v55 = vpop.permute.xlu2 %2684 }
 0x3bb   :  { %v2687_v57 = vunpack.i.h.bf16 %v2685_v55 }
 0x3bc   :  { %v1992_v60 = vmul.f32 %v2667_v5, %v1736_v23  ;;  %v2682_v5 = vunpack.i.h.bf16 %v2680_v17 }
 0x3be   :  { %v2045_v3 = vsel %vm2003_vm2, %v1992_v60, 0.0 }
 0x3bf   :  { %v2046_v18 = vadd.f32 %v2045_v3, %v2044_v30  ;;  %v1690_v9 = vpop.f32.mrf.mxu0  ;;  %v1623_v14 = vpop.f32.mrf.mxu3  ;;  %v1711_v3 = vadd.f32 %v1710_v46, %v1622_v6 }
 0x3c0   :  { %v1691_v48 = vadd.f32 %v1690_v9, %v1602_v44  ;;  %v1624_v2 = vadd.f32 %v1623_v14, %v3814_v8  ;;  %v2686_v44 = vunpack.i.l.bf16 %v2685_v55 }
 0x3c2   :  { %v1737_v24 = vmax.f32 %v1691_v48, 0.0  ;;  %v1713_v9 = vadd.f32 %v1712_v20, %v1624_v2 }
 0x3c4   :  { %v1993_v38 = vmul.f32 %v2671_v13, %v1737_v24  ;;  %v2690_v13 = vpop.permute.xlu0 %2689 }
 0x3c6   :  { %v2047_v19 = vsel %vm2003_vm2, %v1993_v38, 0.0 }
 0x3c7   :  { %v2048_v63 = vadd.f32 %v2047_v19, %v2046_v18  ;;  %v1692_v58 = vpop.f32.mrf.mxu0  ;;  %v1619_v18 = vadd.f32 %v1618_v51, %v3779_v28  ;;  %v2692_v28 = vunpack.i.h.bf16 %v2690_v13 }
 0x3c8   :  { %v1693_v16 = vadd.f32 %v1692_v58, %v1604_v21  ;;  %v1745_v21 = vmax.f32 %v1711_v3, 0.0  ;;  %v2691_v58 = vunpack.i.l.bf16 %v2690_v13 }
 0x3ca   :  { %v1738_v54 = vmax.f32 %v1693_v16, 0.0  ;;  %v1746_v16 = vmax.f32 %v1713_v9, 0.0 }
 0x3cc   :  { %v1994_v42 = vmul.f32 %v2672_v29, %v1738_v54 }
 0x3ce   :  { %v2049_v25 = vsel %vm2003_vm2, %v1994_v42, 0.0 }
 0x3cf   :  { %v2050_v11 = vadd.f32 %v2049_v25, %v2048_v63  ;;  %v1695_v53 = vpop.f32.mrf.mxu0 }
 0x3d0   :  { %v1696_v50 = vadd.f32 %v1695_v53, %v1607_v37  ;;  %v2001_v37 = vmul.f32 %v2691_v58, %v1745_v21 }
 0x3d2   :  { %v1739_v59 = vmax.f32 %v1696_v50, 0.0  ;;  %v2063_v7 = vsel %vm2003_vm2, %v2001_v37, 0.0 }
 0x3d4   :  { %v1995_v61 = vmul.f32 %v2676_v12, %v1739_v59 }
 0x3d6   :  { %v2051_v4 = vsel %vm2003_vm2, %v1995_v61, 0.0 }
 0x3d7   :  { %v2052_v52 = vadd.f32 %v2051_v4, %v2050_v11  ;;  %v1697_v27 = vpop.f32.mrf.mxu0  ;;  %v2002_v11 = vmul.f32 %v2692_v28, %v1746_v16 }
 0x3d8   :  { %v1698_v39 = vadd.f32 %v1697_v27, %v1609_v10 }
 0x3d9   :  { %v2065_v59 = vsel %vm2003_vm2, %v2002_v11, 0.0 }
 0x3da   :  { %v1740_v31 = vmax.f32 %v1698_v39, 0.0 }
 0x3dc   :  { %v1996_v56 = vmul.f32 %v2677_v43, %v1740_v31 }
 0x3de   :  { %v2053_v15 = vsel %vm2003_vm2, %v1996_v56, 0.0 }
 0x3df   :  { %v1700_v26 = vpop.f32.mrf.mxu0  ;;  %v2054_v24 = vadd.f32 %v2053_v15, %v2052_v52 }
 0x3e0   :  { %v1701_v35 = vadd.f32 %v1700_v26, %v1612_v1 }
 0x3e2   :  { %v1741_v32 = vmax.f32 %v1701_v35, 0.0 }
 0x3e4   :  { %v1997_v23 = vmul.f32 %v2681_v0, %v1741_v32 }
 0x3e6   :  { %v2055_v41 = vsel %vm2003_vm2, %v1997_v23, 0.0 }
 0x3e7   :  { %v1702_v47 = vpop.f32.mrf.mxu0  ;;  %v2056_v63 = vadd.f32 %v2055_v41, %v2054_v24 }
 0x3e8   :  { %v1703_v22 = vadd.f32 %v1702_v47, %v1614_v49 }
 0x3ea   :  { %v1742_v34 = vmax.f32 %v1703_v22, 0.0 }
 0x3ec   :  { %v1998_v33 = vmul.f32 %v2682_v5, %v1742_v34 }
 0x3ee   :  { %v2057_v8 = vsel %vm2003_vm2, %v1998_v33, 0.0 }
 0x3ef   :  { %v1705_v30 = vpop.f32.mrf.mxu0  ;;  %v2058_v42 = vadd.f32 %v2057_v8, %v2056_v63 }
 0x3f0   :  { %v1706_v36 = vadd.f32 %v1705_v30, %v1617_v45 }
 0x3f2   :  { %v1743_v60 = vmax.f32 %v1706_v36, 0.0 }
 0x3f4   :  { %v1999_v48 = vmul.f32 %v2686_v44, %v1743_v60 }
 0x3f6   :  { %v2059_v29 = vsel %vm2003_vm2, %v1999_v48, 0.0 }
 0x3f7   :  { %v1707_v38 = vpop.f32.mrf.mxu0  ;;  %v2060_v40 = vadd.f32 %v2059_v29, %v2058_v42 }
 0x3f8   :  { %v1708_v19 = vadd.f32 %v1707_v38, %v1619_v18 }
 0x3fa   :  { %v1744_v54 = vmax.f32 %v1708_v19, 0.0 }
 0x3fc   :  { %v2000_v25 = vmul.f32 %v2687_v57, %v1744_v54 }
 0x3fe   :  { %v2061_v53 = vsel %vm2003_vm2, %v2000_v25, 0.0 }
 0x3ff   :  { %v2062_v50 = vadd.f32 %v2061_v53, %v2060_v40 }
 0x401   :  { %v2064_v12 = vadd.f32 %v2063_v7, %v2062_v50 }
 0x403   :  { %v2066_v61 = vadd.f32 %v2065_v59, %v2064_v12 }
 0x405   :  { %v2067_v4 = vrot.slane %v2066_v61, 4 }
 0x407   :  { %v2068_v52 = vadd.f32 %v2067_v4, %v2066_v61 }
 0x409   :  { %v2069_v27 = vrot.slane %v2068_v52, 2 }
 0x40b   :  { %v2070_v51 = vadd.f32 %v2069_v27, %v2068_v52 }
 0x40d   :  { %v2071_v26 = vrot.slane %v2070_v51, 1 }
 0x40f   :  { %v2072_v10 = vadd.f32 %v2071_v26, %v2070_v51 }
 0x411   :  { %v2075_v47 = vadd.f32 %v2074_v62, %v2072_v10 }
 0x413   :  { %2077 = vst.msk [vmem:[#allocation3] sm:$0x1] %vm2076_vm3, %v2075_v47 }
 0x414   :  { %2088 = dma.vmem_to_hbm [thread:$0]  %s2084_s19, 16, %s2086_s4, [#allocation4]  }
 0x415   :  { %2717 = dma.done.wait [#allocation4], 16  }
 0x416   :  { %2718 = vsyncadd [#allocation4], 4294967280 }
 0x417   :  { %2093 = vsyncpa [#allocation4], 1 }

</bundles_post_ra>
